<compile_context>
chip_gen: v7x
topology: tpu7x:2x2x1
jax: 0.10.0
libtpu: 0.0.40
codegen_flags: <defaults>
</compile_context>

<pallas_src>
import functools

import jax
import jax.numpy as jnp
from jax.experimental import pallas as pl
from jax.experimental.pallas import tpu as pltpu


def _round_up(n, m):
    return ((n + m - 1) // m) * m


def _auto_block_b(B):
    # Largest lane-aligned tile that still leaves >= 4 grid steps (so v7x's two
    # TensorCores both get work and the BlockSpec pipeline can overlap DMA),
    # capped at 512 rows (~85% of HBM roofline measured for 512-wide tiles).
    tile = _round_up(max(pl.cdiv(B, 4), 8), 8)
    return min(512, tile, _round_up(B, 8))


def res_kernel(x_ref, wa_ref, b1_ref, w2_ref, bc_ref, g_ref, bt_ref, o_ref, *, hp):
    # In-kernel cast: x is read from HBM once at its native dtype and only
    # converted to the MXU dtype in VMEM (no wrapper pad/cast HBM pass).
    x = x_ref[...].astype(wa_ref.dtype)

    # Fused lin1 || lin3: one MXU pass over x. Columns [0, hp) hold the
    # (zero-padded) lin1 pre-activation; columns [hp, hp+odim) hold lin3(x)
    # (its bias is folded into bc below). hp is a 128-lane boundary, so the
    # two slices need no cross-lane movement.
    z = jnp.dot(x, wa_ref[...], preferred_element_type=jnp.float32)
    h1 = jnp.maximum(z[:, :hp] + b1_ref[...], 0.0)   # relu(lin1(x)), padded cols stay 0
    r = z[:, hp:]                                     # lin3(x) (no bias yet)

    # lin2 (dropout = identity in eval mode). bc = b2 + b3, one combined add.
    h = jnp.dot(h1.astype(w2_ref.dtype), w2_ref[...],
                preferred_element_type=jnp.float32)
    y = h + r + bc_ref[...]

    # LayerNorm over odim, eps = 1e-5 (PyTorch default). Two-pass statistics
    # for numerical robustness; rsqrt on the EUP; gamma folded into inv_std.
    mean = jnp.mean(y, axis=-1, keepdims=True)
    c = y - mean
    var = jnp.mean(c * c, axis=-1, keepdims=True)
    inv_std = jax.lax.rsqrt(var + 1e-5)
    o_ref[...] = (c * (g_ref[...] * inv_std) + bt_ref[...]).astype(o_ref.dtype)


def pack_res_params(w1, b1, w2, b2, w3, b3, gamma, beta, *,
                    compute_dtype=jnp.bfloat16):
    """One-time packing (call at parameter init/update, NOT per forward).

    Weights are stored as [in, out] (== PyTorch weight.T). Returns:
      wa : [idim, HP + odim]  = W1 (zero-padded to HP lanes) || W3, MXU dtype
      b1 : [1, HP]            = b1 zero-padded, f32
      w2 : [HP, odim]         = W2 zero-padded on the input side, MXU dtype
      bc : [1, odim]          = b2 + b3, f32
      gamma/beta : [1, odim]  f32
    """
    f32 = jnp.float32
    idim, hdim = w1.shape
    odim = w2.shape[1]
    HP = _round_up(hdim, 128)

    wa = jnp.zeros((idim, HP + odim), f32)
    wa = wa.at[:, :hdim].set(w1.astype(f32)).at[:, HP:].set(w3.astype(f32))
    b1p = jnp.zeros((1, HP), f32).at[:, :hdim].set(b1.reshape(1, -1).astype(f32))
    w2p = jnp.zeros((HP, odim), f32).at[:hdim, :].set(w2.astype(f32))
    bc = (b2.astype(f32) + b3.astype(f32)).reshape(1, -1)

    return dict(
        wa=wa.astype(compute_dtype),
        b1=b1p,
        w2=w2p.astype(compute_dtype),
        bc=bc,
        gamma=gamma.reshape(1, -1).astype(f32),
        beta=beta.reshape(1, -1).astype(f32),
    )


@functools.partial(jax.jit, static_argnames=("block_b",))
def res_forward(x, params, *, block_b=None):
    """x: [B, idim]; params from pack_res_params."""
    B, idim = x.shape
    HP = params["b1"].shape[1]
    odim = params["bc"].shape[1]

    if block_b is None:
        block_b = _auto_block_b(B)

    grid = (pl.cdiv(B, block_b),)   # ragged last block handled by Pallas masking
    const = lambda i: (0, 0)

    out = pl.pallas_call(
        functools.partial(res_kernel, hp=HP),
        out_shape=jax.ShapeDtypeStruct((B, odim), x.dtype),
        grid=grid,
        in_specs=[
            pl.BlockSpec((block_b, idim), lambda i: (i, 0)),     # x tile (pipelined)
            pl.BlockSpec((idim, HP + odim), const),              # W1 || W3 (resident)
            pl.BlockSpec((1, HP), const),                        # b1 (padded)
            pl.BlockSpec((HP, odim), const),                     # W2 (resident)
            pl.BlockSpec((1, odim), const),                      # b2 + b3
            pl.BlockSpec((1, odim), const),                      # gamma
            pl.BlockSpec((1, odim), const),                      # beta
        ],
        out_specs=pl.BlockSpec((block_b, odim), lambda i: (i, 0)),
        compiler_params=pltpu.CompilerParams(
            dimension_semantics=("parallel",)),                  # v7x: 2 TCs split batch
    )(x, params["wa"], params["b1"], params["w2"],
      params["bc"], params["gamma"], params["beta"])

    return out


def res_reference(x, w1, b1, w2, b2, w3, b3, gamma, beta, compute_dtype=None):
    """Pure-JAX reference (HIGHEST-precision matmuls). If compute_dtype is
    given, matmul inputs are quantized to that dtype (mirrors the MXU path)."""
    f32 = jnp.float32
    prec = jax.lax.Precision.HIGHEST

    def q(a):
        return a.astype(compute_dtype).astype(f32) if compute_dtype is not None else a.astype(f32)

    xq = q(x)
    h1 = jnp.maximum(jnp.dot(xq, q(w1), precision=prec) + b1.astype(f32), 0.0)
    h = jnp.dot(q(h1), q(w2), precision=prec) + b2.astype(f32)
    r = jnp.dot(xq, q(w3), precision=prec) + b3.astype(f32)
    y = h + r
    mean = jnp.mean(y, axis=-1, keepdims=True)
    var = jnp.mean((y - mean) ** 2, axis=-1, keepdims=True)
    return (y - mean) / jnp.sqrt(var + 1e-5) * gamma.astype(f32) + beta.astype(f32)


if __name__ == "__main__":
    # Res(idim, hdim, odim, drop) — small feature dims; batch big (and ragged)
    # enough to exercise the batch grid, ragged last block, and megacore split.
    batch, idim, hdim, odim = 1000, 32, 64, 32   # auto block_b=256 -> grid of 4

    key = jax.random.PRNGKey(0)
    kx, k1, k2, k3, kb1, kb2, kb3 = jax.random.split(key, 7)

    x = jax.random.normal(kx, (batch, idim), dtype=jnp.float32)

    # Parameters follow nn.Linear / nn.LayerNorm shapes, weights stored
    # transposed so the kernel computes x @ W + b.
    w1 = jax.random.normal(k1, (idim, hdim), dtype=jnp.float32) * 0.1
    b1 = jax.random.normal(kb1, (hdim,), dtype=jnp.float32) * 0.1
    w2 = jax.random.normal(k2, (hdim, odim), dtype=jnp.float32) * 0.1
    b2 = jax.random.normal(kb2, (odim,), dtype=jnp.float32) * 0.1
    w3 = jax.random.normal(k3, (idim, odim), dtype=jnp.float32) * 0.1
    b3 = jax.random.normal(kb3, (odim,), dtype=jnp.float32) * 0.1
    gamma = jnp.ones((odim,), dtype=jnp.float32)
    beta = jnp.zeros((odim,), dtype=jnp.float32)

    # 1) f32-MXU path vs. f32 reference.
    p_f32 = pack_res_params(w1, b1, w2, b2, w3, b3, gamma, beta,
                            compute_dtype=jnp.float32)
    out_f32 = jax.block_until_ready(res_forward(x, p_f32))
    ref_f32 = res_reference(x, w1, b1, w2, b2, w3, b3, gamma, beta)
    assert out_f32.shape == (batch, odim)
    assert jnp.allclose(out_f32, ref_f32, atol=2e-3, rtol=2e-3)

    # 2) bf16-MXU fast path (default) vs. a reference that applies the same
    #    bf16 quantization to the matmul inputs (LN / bias math stays f32).
    p_bf16 = pack_res_params(w1, b1, w2, b2, w3, b3, gamma, beta)  # bf16 default
    out_bf16 = jax.block_until_ready(res_forward(x, p_bf16))
    ref_bf16 = res_reference(x, w1, b1, w2, b2, w3, b3, gamma, beta,
                             compute_dtype=jnp.bfloat16)
    assert out_bf16.shape == (batch, odim)
    assert jnp.allclose(out_bf16, ref_bf16, atol=1e-2, rtol=1e-2)

    # TODO(synk): training-mode dropout (random masking/scaling) is not
    # implemented; forward matches the module in eval mode.
    print("KERNEL_OK")
</pallas_src>

<mosaic_0001>
module attributes {stable_mosaic.version = 11 : i64} {
  func.func @res_kernel(%arg0: i32, %arg1: memref<256x32xf32, #tpu.memory_space<vmem>>, %arg2: memref<32x160xf32, #tpu.memory_space<vmem>>, %arg3: memref<1x128xf32, #tpu.memory_space<vmem>>, %arg4: memref<128x32xf32, #tpu.memory_space<vmem>>, %arg5: memref<1x32xf32, #tpu.memory_space<vmem>>, %arg6: memref<1x32xf32, #tpu.memory_space<vmem>>, %arg7: memref<1x32xf32, #tpu.memory_space<vmem>>, %arg8: memref<256x32xf32, #tpu.memory_space<vmem>>) attributes {dimension_semantics = [#tpu.dimension_semantics<parallel>], iteration_bounds = array<i64: 4>, scalar_prefetch = 0 : i64, scratch_operands = 0 : i64, tpu.core_type = #tpu.core_type<tc>, window_params = [{transform_indices = @transform_0, window_bounds = array<i64: 256, 32>}, {pipeline_mode = #tpu.pipeline_mode<synchronous>, transform_indices = @transform_1, window_bounds = array<i64: 32, 160>}, {pipeline_mode = #tpu.pipeline_mode<synchronous>, transform_indices = @transform_2, window_bounds = array<i64: 1, 128>}, {pipeline_mode = #tpu.pipeline_mode<synchronous>, transform_indices = @transform_3, window_bounds = array<i64: 128, 32>}, {pipeline_mode = #tpu.pipeline_mode<synchronous>, transform_indices = @transform_4, window_bounds = array<i64: 1, 32>}, {pipeline_mode = #tpu.pipeline_mode<synchronous>, transform_indices = @transform_5, window_bounds = array<i64: 1, 32>}, {pipeline_mode = #tpu.pipeline_mode<synchronous>, transform_indices = @transform_6, window_bounds = array<i64: 1, 32>}, {transform_indices = @transform_7, window_bounds = array<i64: 256, 32>}]} {
    %c0 = arith.constant 0 : index
    %c0_0 = arith.constant 0 : index
    %0 = vector.load %arg1[%c0, %c0_0] : memref<256x32xf32, #tpu.memory_space<vmem>>, vector<256x32xf32>
    %c0_1 = arith.constant 0 : index
    %c0_2 = arith.constant 0 : index
    %1 = vector.load %arg2[%c0_1, %c0_2] : memref<32x160xf32, #tpu.memory_space<vmem>>, vector<32x160xf32>
    %cst = arith.constant dense<0.000000e+00> : vector<256x160xf32>
    %2 = tpu.matmul %0, %1, %cst {dimension_numbers = #tpu.dot_dimension_numbers<[1], [0], [0], [1], [0, 0, 1, 1], [], []>} : vector<256x32xf32>, vector<32x160xf32>, vector<256x160xf32> -> vector<256x160xf32>
    %3 = vector.extract_strided_slice %2 {offsets = [0, 0], sizes = [256, 128], strides = [1, 1]} : vector<256x160xf32> to vector<256x128xf32>
    %c0_3 = arith.constant 0 : index
    %c0_4 = arith.constant 0 : index
    %4 = vector.load %arg3[%c0_3, %c0_4] : memref<1x128xf32, #tpu.memory_space<vmem>>, vector<1x128xf32>
    %5 = vector.broadcast %4 : vector<1x128xf32> to vector<256x128xf32>
    %6 = arith.addf %3, %5 : vector<256x128xf32>
    %cst_5 = arith.constant 0.000000e+00 : f32
    %7 = vector.broadcast %cst_5 : f32 to vector<256x128xf32>
    %8 = arith.maximumf %6, %7 : vector<256x128xf32>
    %9 = vector.extract_strided_slice %2 {offsets = [0, 128], sizes = [256, 32], strides = [1, 1]} : vector<256x160xf32> to vector<256x32xf32>
    %c0_6 = arith.constant 0 : index
    %c0_7 = arith.constant 0 : index
    %10 = vector.load %arg4[%c0_6, %c0_7] : memref<128x32xf32, #tpu.memory_space<vmem>>, vector<128x32xf32>
    %cst_8 = arith.constant dense<0.000000e+00> : vector<256x32xf32>
    %11 = tpu.matmul %8, %10, %cst_8 {dimension_numbers = #tpu.dot_dimension_numbers<[1], [0], [0], [1], [0, 0, 1, 1], [], []>} : vector<256x128xf32>, vector<128x32xf32>, vector<256x32xf32> -> vector<256x32xf32>
    %12 = arith.addf %11, %9 : vector<256x32xf32>
    %c0_9 = arith.constant 0 : index
    %c0_10 = arith.constant 0 : index
    %13 = vector.load %arg5[%c0_9, %c0_10] : memref<1x32xf32, #tpu.memory_space<vmem>>, vector<1x32xf32>
    %14 = vector.broadcast %13 : vector<1x32xf32> to vector<256x32xf32>
    %15 = arith.addf %12, %14 : vector<256x32xf32>
    %cst_11 = arith.constant dense<0.000000e+00> : vector<256xf32>
    %16 = vector.multi_reduction <add>, %15, %cst_11 [1] : vector<256x32xf32> to vector<256xf32>
    %17 = vector.shape_cast %16 : vector<256xf32> to vector<256x1xf32>
    %cst_12 = arith.constant 3.200000e+01 : f32
    %18 = vector.broadcast %cst_12 : f32 to vector<256x1xf32>
    %19 = arith.divf %17, %18 : vector<256x1xf32>
    %20 = vector.broadcast %19 : vector<256x1xf32> to vector<256x32xf32>
    %21 = arith.subf %15, %20 : vector<256x32xf32>
    %22 = arith.mulf %21, %21 : vector<256x32xf32>
    %cst_13 = arith.constant dense<0.000000e+00> : vector<256xf32>
    %23 = vector.multi_reduction <add>, %22, %cst_13 [1] : vector<256x32xf32> to vector<256xf32>
    %24 = vector.shape_cast %23 : vector<256xf32> to vector<256x1xf32>
    %cst_14 = arith.constant 3.200000e+01 : f32
    %25 = vector.broadcast %cst_14 : f32 to vector<256x1xf32>
    %26 = arith.divf %24, %25 : vector<256x1xf32>
    %cst_15 = arith.constant 9.99999974E-6 : f32
    %27 = vector.broadcast %cst_15 : f32 to vector<256x1xf32>
    %28 = arith.addf %26, %27 : vector<256x1xf32>
    %29 = math.rsqrt %28 : vector<256x1xf32>
    %c0_16 = arith.constant 0 : index
    %c0_17 = arith.constant 0 : index
    %30 = vector.load %arg6[%c0_16, %c0_17] : memref<1x32xf32, #tpu.memory_space<vmem>>, vector<1x32xf32>
    %31 = vector.broadcast %30 : vector<1x32xf32> to vector<256x32xf32>
    %32 = vector.broadcast %29 : vector<256x1xf32> to vector<256x32xf32>
    %33 = arith.mulf %31, %32 : vector<256x32xf32>
    %34 = arith.mulf %21, %33 : vector<256x32xf32>
    %c0_18 = arith.constant 0 : index
    %c0_19 = arith.constant 0 : index
    %35 = vector.load %arg7[%c0_18, %c0_19] : memref<1x32xf32, #tpu.memory_space<vmem>>, vector<1x32xf32>
    %36 = vector.broadcast %35 : vector<1x32xf32> to vector<256x32xf32>
    %37 = arith.addf %34, %36 : vector<256x32xf32>
    %c0_20 = arith.constant 0 : index
    %c0_21 = arith.constant 0 : index
    %38 = vector.load %arg8[%c0_20, %c0_21] : memref<256x32xf32, #tpu.memory_space<vmem>>, vector<256x32xf32>
    tpu.vector_store %arg8[%c0_20, %c0_21], %37 {strides = array<i32>} : memref<256x32xf32, #tpu.memory_space<vmem>>, vector<256x32xf32>,
    return
  }
  func.func @transform_0(%arg0: i32) -> (i32, i32) {
    %c0_i32 = arith.constant 0 : i32
    %c0_i32_0 = arith.constant 0 : i32
    return %arg0, %c0_i32 : i32, i32
  }
  func.func @transform_1(%arg0: i32) -> (i32, i32) {
    %c0_i32 = arith.constant 0 : i32
    %c0_i32_0 = arith.constant 0 : i32
    %c0_i32_1 = arith.constant 0 : i32
    return %c0_i32, %c0_i32_0 : i32, i32
  }
  func.func @transform_2(%arg0: i32) -> (i32, i32) {
    %c0_i32 = arith.constant 0 : i32
    %c0_i32_0 = arith.constant 0 : i32
    %c0_i32_1 = arith.constant 0 : i32
    return %c0_i32, %c0_i32_0 : i32, i32
  }
  func.func @transform_3(%arg0: i32) -> (i32, i32) {
    %c0_i32 = arith.constant 0 : i32
    %c0_i32_0 = arith.constant 0 : i32
    %c0_i32_1 = arith.constant 0 : i32
    return %c0_i32, %c0_i32_0 : i32, i32
  }
  func.func @transform_4(%arg0: i32) -> (i32, i32) {
    %c0_i32 = arith.constant 0 : i32
    %c0_i32_0 = arith.constant 0 : i32
    %c0_i32_1 = arith.constant 0 : i32
    return %c0_i32, %c0_i32_0 : i32, i32
  }
  func.func @transform_5(%arg0: i32) -> (i32, i32) {
    %c0_i32 = arith.constant 0 : i32
    %c0_i32_0 = arith.constant 0 : i32
    %c0_i32_1 = arith.constant 0 : i32
    return %c0_i32, %c0_i32_0 : i32, i32
  }
  func.func @transform_6(%arg0: i32) -> (i32, i32) {
    %c0_i32 = arith.constant 0 : i32
    %c0_i32_0 = arith.constant 0 : i32
    %c0_i32_1 = arith.constant 0 : i32
    return %c0_i32, %c0_i32_0 : i32, i32
  }
  func.func @transform_7(%arg0: i32) -> (i32, i32) {
    %c0_i32 = arith.constant 0 : i32
    %c0_i32_0 = arith.constant 0 : i32
    return %arg0, %c0_i32 : i32, i32
  }
}

</mosaic_0001>

<bundles_post_ra>
// kernel: res_forward.1
= control target key start
LH: loop header
LB: loop body
LE: loop exit
PB: predicated region body
PF: predicated region fallthrough
CT: control target
= control target key end

     0   :  { %s2428_s24 = smov 0   ;;  %s2430_s25 = smov 0   ;;  %s3461_s0 = inlined_call_operand.vmem [shape: f32[1000,32], index: 0, kind: input, shape index: {}]   ;;  %s3462_s1 = inlined_call_operand.vmem [shape: f32[32,160], index: 1, kind: input, shape index: {}]   ;;  %s3463_s2 = inlined_call_operand.vmem [shape: f32[1,128], index: 2, kind: input, shape index: {}]   ;;  %s3464_s3 = inlined_call_operand.vmem [shape: f32[128,32], index: 3, kind: input, shape index: {}]   ;;  %s3465_s4 = inlined_call_operand.vmem [shape: f32[1,32], index: 4, kind: input, shape index: {}]   ;;  %s3466_s5 = inlined_call_operand.vmem [shape: f32[1,32], index: 5, kind: input, shape index: {}]   ;;  %s3467_s6 = inlined_call_operand.vmem [shape: f32[1,32], index: 6, kind: input, shape index: {}]   ;;  %s3468_s7 = inlined_call_operand.vmem [shape: f32[1000,32], index: 7, kind: output, shape index: {}]  }
   0x1   :  { %s2432_s26 = smov 0  }
   0x2 LB: > { %s2441_s27 = sadd.s32 4294967295, %s2353_s26   ;;  %s2443_s28 = sadd.s32 1, %s2353_s26   ;;  %s2353_s26 = sphi %s2432_s26, %s3477_s26   ;;  %s2349_s25 = sphi %s2430_s25, %s3476_s25   ;;  %s2345_s24 = sphi %s2428_s24, %s3475_s24  }
   0x3   : > { %s173_s29 = ssub.s32 %s2353_s26, %s2443_s28  ;;  %s176_s30 = sadd.s32 1, %s2349_s25 }
   0x4   : > { %p174_p0 = scmp.eq.s32.totalorder %s173_s29, 0  ;;  %p186_p1 = scmp.ne.s32.totalorder %s2349_s25, %s2345_s24 }
   0x5   : > { %p187_p2 = scmp.eq.s32.totalorder %s2441_s27, 3  ;;  %p1914_p3 = scmp.ge.s32.totalorder %s2353_s26, 1 }
   0x6   : > { %s2451_s8 = scalar_select %p174_p0, %s2349_s25, %s176_s30  }
   0x7   : > { %p2453_p4 = por %p187_p2, %p186_p1  ;;  %p246_p5 = scmp.lt.s32.totalorder %s2353_s26, 5 }
   0x9   : > { %p247_p6 = pnand %p1914_p3, %p246_p5 }
   0xa   : > { %v333_v0 = vld [vmem:[%s3462_s1 + $0x8] sm:$0xff] (!%p247_p6)  ;;  %v335_v1 = vld [vmem:[%s3462_s1 + $0x18] sm:$0xff] (!%p247_p6)  ;;  %v332_v2 = vld [vmem:[%s3462_s1] sm:$0xff] (!%p247_p6)  ;;  %s2467_s16 = sshll.u32 (!%p247_p6), %s2441_s27, 5  ;;  %v2387_v7 = vmov (!%p247_p6), 0.0   ;;  %vm340_vm0 = vcmask (!%p247_p6), 261120  }
   0xb   : > { %250 = sbr.rel (%p247_p6) target bundleno = 934 (0x3a6), region = 48  ;;  %v2102_v3 = vpack.c.bf16 (!%p247_p6), %v335_v1, %v333_v0  ;;  %v334_v4 = vld [vmem:[%s3462_s1 + $0x10] sm:$0xff] (!%p247_p6)  ;;  %v337_v5 = vld [vmem:[%s3462_s1 + $0x28] sm:$0xff] (!%p247_p6)  ;;  %v339_v6 = vld [vmem:[%s3462_s1 + $0x38] sm:$0xff] (!%p247_p6)  ;;  %501 = vmatprep.mubr.f32.mxu0 (!%p247_p6), %v2387_v7  ;;  %p286_p7 = scmp.lt.s32.totalorder (!%p247_p6), %s2467_s16, 124  ;;  %645 = vmatprep.mubr.f32.mxu1 (!%p247_p6), %v2387_v7 }
   0xc   : > { %v2104_v8 = vpack.c.bf16 (!%p247_p6), %v334_v4, %v332_v2  ;;  %v2106_v9 = vpack.c.bf16 (!%p247_p6), %v339_v6, %v337_v5  ;;  %v336_v10 = vld [vmem:[%s3462_s1 + $0x20] sm:$0xff] (!%p247_p6)  ;;  %v338_v11 = vld [vmem:[%s3462_s1 + $0x30] sm:$0xff] (!%p247_p6)  ;;  %v766_v13 = vld [vmem:[%s3464_s3 + $0x8] sm:$0xff] (!%p247_p6)  ;;  %s278_s23 = sand.u32 (!%p247_p6), 1, %s2345_s24  }
   0xd   : > { %v765_v12 = vld [vmem:[%s3464_s3] sm:$0xff] (!%p247_p6)  ;;  %2103 = vmatprep.subr.bf16.mxu0 (!%p247_p6), %v2102_v3  ;;  %2142 = vmatprep.subr.bf16.mxu1 (!%p247_p6), %v2102_v3  ;;  %v2108_v14 = vpack.c.bf16 (!%p247_p6), %v338_v11, %v336_v10  ;;  %v767_v17 = vld [vmem:[%s3464_s3 + $0x10] sm:$0xff] (!%p247_p6)  ;;  %v768_v18 = vld [vmem:[%s3464_s3 + $0x18] sm:$0xff] (!%p247_p6)  ;;  %s1915_s26 = sshll.u32 (!%p247_p6), %s278_s23, 8 }
   0xe   : > { %2105 = vmatpush1.bf16.msra.mxu0 (!%p247_p6), %v2104_v8  ;;  %2144 = vmatpush1.bf16.msra.mxu1 (!%p247_p6), %v2104_v8  ;;  %v2110_v15 = vpack.c.bf16 (!%p247_p6), %v766_v13, %v765_v12  ;;  %v2114_v21 = vpack.c.bf16 (!%p247_p6), %v768_v18, %v767_v17  ;;  %v769_v22 = vld [vmem:[%s3464_s3 + $0x20] sm:$0xff] (!%p247_p6)  ;;  %v770_v23 = vld [vmem:[%s3464_s3 + $0x28] sm:$0xff] (!%p247_p6)  ;;  %v771_v27 = vld [vmem:[%s3464_s3 + $0x30] sm:$0xff] (!%p247_p6)  ;;  %s3164_s24 = scalar_lea.vmem (!%p247_p6), [#allocation2], %s1915_s26  }
   0xf   : > { %2107 = vmatprep.subr.bf16.mxu0 (!%p247_p6), %v2106_v9  ;;  %2143 = vmatprep.subr.bf16.mxu1 (!%p247_p6), %v2106_v9  ;;  %v2118_v26 = vpack.c.bf16 (!%p247_p6), %v770_v23, %v769_v22  ;;  %v772_v28 = vld [vmem:[%s3464_s3 + $0x38] sm:$0xff] (!%p247_p6)  ;;  %v773_v32 = vld [vmem:[%s3464_s3 + $0x40] sm:$0xff] (!%p247_p6)  ;;  %v774_v33 = vld [vmem:[%s3464_s3 + $0x48] sm:$0xff] (!%p247_p6) }
  0x10   : > { %v2122_v31 = vpack.c.bf16 (!%p247_p6), %v772_v28, %v771_v27  ;;  %v2126_v36 = vpack.c.bf16 (!%p247_p6), %v774_v33, %v773_v32  ;;  %v775_v37 = vld [vmem:[%s3464_s3 + $0x50] sm:$0xff] (!%p247_p6)  ;;  %v776_v38 = vld [vmem:[%s3464_s3 + $0x58] sm:$0xff] (!%p247_p6)  ;;  %v777_v61 = vld [vmem:[%s3464_s3 + $0x60] sm:$0xff] (!%p247_p6) }
  0x11   : > { %v2130_v41 = vpack.c.bf16 (!%p247_p6), %v776_v38, %v775_v37  ;;  %v778_v62 = vld [vmem:[%s3464_s3 + $0x68] sm:$0xff] (!%p247_p6)  ;;  %v779_v1 = vld [vmem:[%s3464_s3 + $0x70] sm:$0xff] (!%p247_p6)  ;;  %v780_v2 = vld [vmem:[%s3464_s3 + $0x78] sm:$0xff] (!%p247_p6) }
  0x12   : > { %s287_s12 = scalar_select %p286_p7, %s2467_s16, 124  ;;  %2109 = vmatpush1.bf16.msra.mxu0 %v2108_v14  ;;  %2145 = vmatpush1.bf16.msra.mxu1 %v2108_v14  ;;  %v2134_v63 = vpack.c.bf16 %v778_v62, %v777_v61  ;;  %v2138_v3 = vpack.c.bf16 %v780_v2, %v779_v1  ;;  %v2638_v5 = vld [vmem:[%s3463_s2] ss:$0 sm:$0xff] }
  0x13   : > { %2111 = vmatprep.subr.bf16.mxu1 %v2110_v15  ;;  %s1580_s10 = ssub.s32 (%p2453_p4), 125, %s2467_s16  ;;  %s1971_s11 = sshll.u32 (%p2453_p4), %s2441_s27, 8 }
  0x14   : > { %s1917_s15 = sshll.u32 %s287_s12, 3  ;;  %p1581_p8 = scmp.lt.s32.totalorder (%p2453_p4), %s1580_s10, 32 }
  0x15   : > { %s2497_s19 = scalar_lea.vmem %s3461_s0, %s1917_s15  ;;  %s3329_s14 = scalar_lea.vmem (%p2453_p4), %s3468_s7, %s1971_s11  }
  0x16   : > { %v300_v16 = vld [vmem:[%s2497_s19] sm:$0xff]  ;;  %v301_v19 = vld [vmem:[%s2497_s19 + $0x8] sm:$0xff]  ;;  %v302_v25 = vld [vmem:[%s2497_s19 + $0x10] sm:$0xff] }
  0x17   : > { %1918 = vmatmul.mubr.msk.f32.vlgmr.msra.gmra.mrb[0].mxu0 %vm340_vm0, %v300_v16  ;;  %v324_v20 = vld [vmem:[%s2497_s19 + $0xc0] sm:$0xff]  ;;  %v325_v24 = vld [vmem:[%s2497_s19 + $0xc8] sm:$0xff]  ;;  %v326_v29 = vld [vmem:[%s2497_s19 + $0xd0] sm:$0xff] }
  0x18   : > { %507 = vmatprep.mubr.f32.mxu0 %v2387_v7  ;;  %1942 = vmatmul.mubr.msk.f32.vlgmr.msra.gmra.mrb[0].mxu1 %vm340_vm0, %v324_v20  ;;  %v303_v30 = vld [vmem:[%s2497_s19 + $0x18] sm:$0xff]  ;;  %v304_v35 = vld [vmem:[%s2497_s19 + $0x20] sm:$0xff]  ;;  %v305_v40 = vld [vmem:[%s2497_s19 + $0x28] sm:$0xff] }
  0x19   : > { %651 = vmatprep.mubr.f32.mxu1 %v2387_v7  ;;  %2113 = vmatpush3.bf16.msra.mxu1 %v2110_v15  ;;  %v327_v34 = vld [vmem:[%s2497_s19 + $0xd8] sm:$0xff]  ;;  %v328_v39 = vld [vmem:[%s2497_s19 + $0xe0] sm:$0xff]  ;;  %v329_v42 = vld [vmem:[%s2497_s19 + $0xe8] sm:$0xff] }
  0x1a   : > { %2115 = vmatprep.subr.bf16.mxu1 %v2114_v21  ;;  %v306_v43 = vld [vmem:[%s2497_s19 + $0x30] sm:$0xff]  ;;  %v307_v45 = vld [vmem:[%s2497_s19 + $0x38] sm:$0xff]  ;;  %v308_v47 = vld [vmem:[%s2497_s19 + $0x40] sm:$0xff] }
  0x1b   : > { %1919 = vmatmul.mubr.msk.f32.gmra.mrb[2].mxu0 %vm340_vm0, %v301_v19  ;;  %v330_v44 = vld [vmem:[%s2497_s19 + $0xf0] sm:$0xff]  ;;  %v331_v46 = vld [vmem:[%s2497_s19 + $0xf8] sm:$0xff]  ;;  %v309_v48 = vld [vmem:[%s2497_s19 + $0x48] sm:$0xff] }
  0x1c   : > { %513 = vmatprep.mubr.f32.mxu0 %v2387_v7  ;;  %1943 = vmatmul.mubr.msk.f32.gmra.mrb[2].mxu1 %vm340_vm0, %v325_v24  ;;  %v310_v49 = vld [vmem:[%s2497_s19 + $0x50] sm:$0xff]  ;;  %v311_v50 = vld [vmem:[%s2497_s19 + $0x58] sm:$0xff]  ;;  %v312_v51 = vld [vmem:[%s2497_s19 + $0x60] sm:$0xff] }
  0x1d   : > { %657 = vmatprep.mubr.f32.mxu1 %v2387_v7  ;;  %2117 = vmatpush3.bf16.msra.mxu1 %v2114_v21  ;;  %v313_v52 = vld [vmem:[%s2497_s19 + $0x68] sm:$0xff]  ;;  %v314_v53 = vld [vmem:[%s2497_s19 + $0x70] sm:$0xff]  ;;  %v315_v54 = vld [vmem:[%s2497_s19 + $0x78] sm:$0xff] }
  0x1e   : > { %2119 = vmatprep.subr.bf16.mxu1 %v2118_v26  ;;  %v316_v55 = vld [vmem:[%s2497_s19 + $0x80] sm:$0xff]  ;;  %v317_v56 = vld [vmem:[%s2497_s19 + $0x88] sm:$0xff]  ;;  %v318_v57 = vld [vmem:[%s2497_s19 + $0x90] sm:$0xff] }
  0x1f   : > { %1920 = vmatmul.mubr.msk.f32.gmra.mrb[4].mxu0 %vm340_vm0, %v302_v25  ;;  %v319_v58 = vld [vmem:[%s2497_s19 + $0x98] sm:$0xff]  ;;  %v320_v59 = vld [vmem:[%s2497_s19 + $0xa0] sm:$0xff]  ;;  %v321_v60 = vld [vmem:[%s2497_s19 + $0xa8] sm:$0xff] }
  0x20   : > { %519 = vmatprep.mubr.f32.mxu0 %v2387_v7  ;;  %1944 = vmatmul.mubr.msk.f32.gmra.mrb[4].mxu1 %vm340_vm0, %v326_v29  ;;  %v322_v0 = vld [vmem:[%s2497_s19 + $0xb0] sm:$0xff]  ;;  %v323_v4 = vld [vmem:[%s2497_s19 + $0xb8] sm:$0xff] }
  0x21   : > { %663 = vmatprep.mubr.f32.mxu1 %v2387_v7  ;;  %2121 = vmatpush3.bf16.msra.mxu1 %v2118_v26 }
  0x22   : > { %2123 = vmatprep.subr.bf16.mxu1 %v2122_v31 }
  0x23   : > { %1921 = vmatmul.mubr.msk.f32.gmra.mrb[6].mxu0 %vm340_vm0, %v303_v30 }
  0x24   : > { %525 = vmatprep.mubr.f32.mxu0 %v2387_v7  ;;  %1945 = vmatmul.mubr.msk.f32.gmra.mrb[6].mxu1 %vm340_vm0, %v327_v34 }
  0x25   : > { %669 = vmatprep.mubr.f32.mxu1 %v2387_v7  ;;  %2125 = vmatpush3.bf16.msra.mxu1 %v2122_v31 }
  0x26   : > { %2127 = vmatprep.subr.bf16.mxu1 %v2126_v36 }
  0x27   : > { %1922 = vmatmul.mubr.msk.f32.gmra.mrb[8].mxu0 %vm340_vm0, %v304_v35 }
  0x28   : > { %531 = vmatprep.mubr.f32.mxu0 %v2387_v7  ;;  %1946 = vmatmul.mubr.msk.f32.gmra.mrb[8].mxu1 %vm340_vm0, %v328_v39 }
  0x29   : > { %675 = vmatprep.mubr.f32.mxu1 %v2387_v7  ;;  %2129 = vmatpush3.bf16.msra.mxu1 %v2126_v36 }
  0x2a   : > { %2131 = vmatprep.subr.bf16.mxu1 %v2130_v41 }
  0x2b   : > { %1923 = vmatmul.mubr.msk.f32.gmra.mrb[10].mxu0 %vm340_vm0, %v305_v40 }
  0x2c   : > { %537 = vmatprep.mubr.f32.mxu0 %v2387_v7  ;;  %1947 = vmatmul.mubr.msk.f32.gmra.mrb[10].mxu1 %vm340_vm0, %v329_v42 }
  0x2d   : > { %681 = vmatprep.mubr.f32.mxu1 %v2387_v7  ;;  %2133 = vmatpush3.bf16.msra.mxu1 %v2130_v41 }
  0x2e   : > { %2135 = vmatprep.subr.bf16.mxu1 %v2134_v63 }
  0x2f   : > { %1924 = vmatmul.mubr.msk.f32.gmra.mrb[12].mxu0 %vm340_vm0, %v306_v43 }
  0x30   : > { %543 = vmatprep.mubr.f32.mxu0 %v2387_v7  ;;  %1948 = vmatmul.mubr.msk.f32.gmra.mrb[12].mxu1 %vm340_vm0, %v330_v44 }
  0x31   : > { %687 = vmatprep.mubr.f32.mxu1 %v2387_v7  ;;  %2137 = vmatpush3.bf16.msra.mxu1 %v2134_v63 }
  0x32   : > { %2139 = vmatprep.subr.bf16.mxu1 %v2138_v3 }
  0x33   : > { %1925 = vmatmul.mubr.msk.f32.gmra.mrb[14].mxu0 %vm340_vm0, %v307_v45 }
  0x34   : > { %549 = vmatprep.mubr.f32.mxu0 %v2387_v7  ;;  %1949 = vmatmul.mubr.msk.f32.gmra.mrb[14].mxu1 %vm340_vm0, %v331_v46 }
  0x35   : > { %2141 = vmatpush3.bf16.msra.mxu1 %v2138_v3 }
  0x37   : > { %1926 = vmatmul.mubr.msk.f32.gmra.mrb[16].mxu0 %vm340_vm0, %v308_v47 }
  0x38   : > { %555 = vmatprep.mubr.f32.mxu0 %v2387_v7 }
  0x3b   : > { %1927 = vmatmul.mubr.msk.f32.gmra.mrb[18].mxu0 %vm340_vm0, %v309_v48 }
  0x3c   : > { %561 = vmatprep.mubr.f32.mxu0 %v2387_v7 }
  0x3f   : > { %1928 = vmatmul.mubr.msk.f32.gmra.mrb[20].mxu0 %vm340_vm0, %v310_v49 }
  0x40   : > { %567 = vmatprep.mubr.f32.mxu0 %v2387_v7 }
  0x43   : > { %1929 = vmatmul.mubr.msk.f32.gmra.mrb[22].mxu0 %vm340_vm0, %v311_v50 }
  0x44   : > { %573 = vmatprep.mubr.f32.mxu0 %v2387_v7 }
  0x47   : > { %1930 = vmatmul.mubr.msk.f32.gmra.mrb[24].mxu0 %vm340_vm0, %v312_v51 }
  0x48   : > { %579 = vmatprep.mubr.f32.mxu0 %v2387_v7 }
  0x4b   : > { %1931 = vmatmul.mubr.msk.f32.gmra.mrb[26].mxu0 %vm340_vm0, %v313_v52 }
  0x4c   : > { %585 = vmatprep.mubr.f32.mxu0 %v2387_v7 }
  0x4f   : > { %1932 = vmatmul.mubr.msk.f32.gmra.mrb[28].mxu0 %vm340_vm0, %v314_v53 }
  0x50   : > { %591 = vmatprep.mubr.f32.mxu0 %v2387_v7 }
  0x53   : > { %1933 = vmatmul.mubr.msk.f32.gmra.mrb[30].mxu0 %vm340_vm0, %v315_v54 }
  0x54   : > { %597 = vmatprep.mubr.f32.mxu0 %v2387_v7 }
  0x57   : > { %1934 = vmatmul.mubr.msk.f32.gmra.mrb[32].mxu0 %vm340_vm0, %v316_v55 }
  0x58   : > { %603 = vmatprep.mubr.f32.mxu0 %v2387_v7 }
  0x5b   : > { %1935 = vmatmul.mubr.msk.f32.gmra.mrb[34].mxu0 %vm340_vm0, %v317_v56 }
  0x5c   : > { %609 = vmatprep.mubr.f32.mxu0 %v2387_v7 }
  0x5f   : > { %1936 = vmatmul.mubr.msk.f32.gmra.mrb[36].mxu0 %vm340_vm0, %v318_v57 }
  0x60   : > { %615 = vmatprep.mubr.f32.mxu0 %v2387_v7 }
  0x63   : > { %1937 = vmatmul.mubr.msk.f32.gmra.mrb[38].mxu0 %vm340_vm0, %v319_v58 }
  0x64   : > { %621 = vmatprep.mubr.f32.mxu0 %v2387_v7 }
  0x67   : > { %1938 = vmatmul.mubr.msk.f32.gmra.mrb[40].mxu0 %vm340_vm0, %v320_v59 }
  0x68   : > { %627 = vmatprep.mubr.f32.mxu0 %v2387_v7 }
  0x6b   : > { %1939 = vmatmul.mubr.msk.f32.gmra.mrb[42].mxu0 %vm340_vm0, %v321_v60 }
  0x6c   : > { %633 = vmatprep.mubr.f32.mxu0 %v2387_v7 }
  0x6f   : > { %1940 = vmatmul.mubr.msk.f32.gmra.mrb[44].mxu0 %vm340_vm0, %v322_v0 }
  0x70   : > { %639 = vmatprep.mubr.f32.mxu0 %v2387_v7 }
  0x73   : > { %1941 = vmatmul.mubr.msk.f32.gmra.mrb[46].mxu0 %vm340_vm0, %v323_v4 }
  0xea   : > { %v503_v6 = vpop.f32.mrb[0].mxu0 }
  0xeb   : > { %v701_v8 = vadd.f32 %v2638_v5, %v503_v6  ;;  %v2641_v9 = vpop.f32.mrb[1].mxu0  ;;  %v2643_v11 = vpop.f32.mrb[0].mxu1 }
  0xec   : > { %v2645_v13 = vpop.f32.mrb[1].mxu1 }
  0xed   : > { %v733_v10 = vmax.f32 %v701_v8, 0.0 }
  0xee   : > { %v509_v12 = vpop.f32.mrb[2].mxu0 }
  0xef   : > { %v702_v7 = vadd.f32 %v2638_v5, %v509_v12  ;;  %v2648_v14 = vpop.f32.mrb[3].mxu0  ;;  %2054 = vmatprep.mubr.f32.mxu1 %v733_v10  ;;  %v2650_v16 = vpop.f32.mrb[2].mxu1 }
  0xf0   : > { %v2652_v18 = vpop.f32.mrb[3].mxu1 }
  0xf1   : > { %v734_v15 = vmax.f32 %v702_v7, 0.0 }
  0xf2   : > { %v515_v17 = vpop.f32.mrb[4].mxu0 }
  0xf3   : > { %v703_v19 = vadd.f32 %v2638_v5, %v515_v17  ;;  %v2655_v20 = vpop.f32.mrb[5].mxu0  ;;  %2055 = vmatmul.mubr.f32.vlgmr.msra.gmra.mrb[16].mxu1 %v734_v15  ;;  %v2657_v22 = vpop.f32.mrb[4].mxu1 }
  0xf4   : > { %v2659_v24 = vpop.f32.mrb[5].mxu1 }
  0xf5   : > { %v735_v21 = vmax.f32 %v703_v19, 0.0 }
  0xf6   : > { %v521_v23 = vpop.f32.mrb[6].mxu0 }
  0xf7   : > { %v704_v25 = vadd.f32 %v2638_v5, %v521_v23  ;;  %v2662_v26 = vpop.f32.mrb[7].mxu0  ;;  %2057 = vmatprep.mubr.f32.mxu1 %v735_v21  ;;  %v2664_v28 = vpop.f32.mrb[6].mxu1 }
  0xf8   : > { %v2666_v30 = vpop.f32.mrb[7].mxu1 }
  0xf9   : > { %v736_v27 = vmax.f32 %v704_v25, 0.0 }
  0xfa   : > { %v527_v29 = vpop.f32.mrb[8].mxu0 }
  0xfb   : > { %v705_v31 = vadd.f32 %v2638_v5, %v527_v29  ;;  %v2669_v32 = vpop.f32.mrb[9].mxu0  ;;  %2058 = vmatmul.mubr.f32.gmra.mrb[18].mxu1 %v736_v27  ;;  %v2671_v34 = vpop.f32.mrb[8].mxu1 }
  0xfc   : > { %v2673_v36 = vpop.f32.mrb[9].mxu1 }
  0xfd   : > { %v737_v33 = vmax.f32 %v705_v31, 0.0 }
  0xfe   : > { %v533_v35 = vpop.f32.mrb[10].mxu0 }
  0xff   : > { %v706_v37 = vadd.f32 %v2638_v5, %v533_v35  ;;  %v2676_v38 = vpop.f32.mrb[11].mxu0  ;;  %2060 = vmatprep.mubr.f32.mxu1 %v737_v33  ;;  %v2678_v40 = vpop.f32.mrb[10].mxu1 }
 0x100   : > { %v2680_v42 = vpop.f32.mrb[11].mxu1 }
 0x101   : > { %v738_v39 = vmax.f32 %v706_v37, 0.0 }
 0x102   : > { %v539_v41 = vpop.f32.mrb[12].mxu0 }
 0x103   : > { %v707_v43 = vadd.f32 %v2638_v5, %v539_v41  ;;  %v2683_v44 = vpop.f32.mrb[13].mxu0  ;;  %2061 = vmatmul.mubr.f32.gmra.mrb[20].mxu1 %v738_v39  ;;  %v2685_v46 = vpop.f32.mrb[12].mxu1 }
 0x104   : > { %v2687_v48 = vpop.f32.mrb[13].mxu1 }
 0x105   : > { %v739_v45 = vmax.f32 %v707_v43, 0.0 }
 0x106   : > { %v545_v47 = vpop.f32.mrb[14].mxu0 }
 0x107   : > { %v708_v49 = vadd.f32 %v2638_v5, %v545_v47  ;;  %v2690_v50 = vpop.f32.mrb[15].mxu0  ;;  %2063 = vmatprep.mubr.f32.mxu1 %v739_v45  ;;  %v2692_v52 = vpop.f32.mrb[14].mxu1 }
 0x108   : > { %v2694_v54 = vpop.f32.mrb[15].mxu1 }
 0x109   : > { %v740_v51 = vmax.f32 %v708_v49, 0.0 }
 0x10a   : > { %v551_v53 = vpop.f32.mrb[16].mxu0 }
 0x10b   : > { %v709_v55 = vadd.f32 %v2638_v5, %v551_v53  ;;  %v2697_v56 = vpop.f32.mrb[17].mxu0  ;;  %2064 = vmatmul.mubr.f32.gmra.mrb[22].mxu1 %v740_v51 }
 0x10d   : > { %v741_v57 = vmax.f32 %v709_v55, 0.0 }
 0x10e   : > { %v557_v58 = vpop.f32.mrb[18].mxu0 }
 0x10f   : > { %v710_v59 = vadd.f32 %v2638_v5, %v557_v58  ;;  %v2700_v60 = vpop.f32.mrb[19].mxu0  ;;  %2066 = vmatprep.mubr.f32.mxu1 %v741_v57 }
 0x111   : > { %v742_v61 = vmax.f32 %v710_v59, 0.0 }
 0x112   : > { %v563_v62 = vpop.f32.mrb[20].mxu0 }
 0x113   : > { %v711_v63 = vadd.f32 %v2638_v5, %v563_v62  ;;  %v2703_v0 = vpop.f32.mrb[21].mxu0  ;;  %2067 = vmatmul.mubr.f32.gmra.mrb[24].mxu1 %v742_v61 }
 0x115   : > { %v743_v1 = vmax.f32 %v711_v63, 0.0 }
 0x116   : > { %v569_v2 = vpop.f32.mrb[22].mxu0 }
 0x117   : > { %v712_v3 = vadd.f32 %v2638_v5, %v569_v2  ;;  %v2706_v4 = vpop.f32.mrb[23].mxu0  ;;  %2069 = vmatprep.mubr.f32.mxu1 %v743_v1 }
 0x119   : > { %v744_v6 = vmax.f32 %v712_v3, 0.0 }
 0x11a   : > { %v575_v8 = vpop.f32.mrb[24].mxu0 }
 0x11b   : > { %v713_v10 = vadd.f32 %v2638_v5, %v575_v8  ;;  %v2709_v12 = vpop.f32.mrb[25].mxu0  ;;  %2070 = vmatmul.mubr.f32.gmra.mrb[26].mxu1 %v744_v6 }
 0x11d   : > { %v745_v7 = vmax.f32 %v713_v10, 0.0 }
 0x11e   : > { %v581_v15 = vpop.f32.mrb[26].mxu0 }
 0x11f   : > { %v714_v17 = vadd.f32 %v2638_v5, %v581_v15  ;;  %v2712_v19 = vpop.f32.mrb[27].mxu0  ;;  %2072 = vmatprep.mubr.f32.mxu1 %v745_v7 }
 0x121   : > { %v746_v21 = vmax.f32 %v714_v17, 0.0 }
 0x122   : > { %v587_v23 = vpop.f32.mrb[28].mxu0 }
 0x123   : > { %v715_v25 = vadd.f32 %v2638_v5, %v587_v23  ;;  %v2715_v27 = vpop.f32.mrb[29].mxu0  ;;  %2073 = vmatmul.mubr.f32.gmra.mrb[28].mxu1 %v746_v21 }
 0x125   : > { %v747_v29 = vmax.f32 %v715_v25, 0.0 }
 0x126   : > { %v593_v31 = vpop.f32.mrb[30].mxu0 }
 0x127   : > { %v716_v33 = vadd.f32 %v2638_v5, %v593_v31  ;;  %v2718_v35 = vpop.f32.mrb[31].mxu0  ;;  %2075 = vmatprep.mubr.f32.mxu1 %v747_v29  ;;  %v725_v31 = vadd.f32 %v2638_v5, %v2643_v11  ;;  %v728_v11 = vadd.f32 %v2638_v5, %v2664_v28 }
 0x129   : > { %v748_v37 = vmax.f32 %v716_v33, 0.0 }
 0x12a   : > { %v599_v39 = vpop.f32.mrb[32].mxu0 }
 0x12b   : > { %v717_v41 = vadd.f32 %v2638_v5, %v599_v39  ;;  %v2721_v43 = vpop.f32.mrb[33].mxu0  ;;  %2076 = vmatmul.mubr.f32.gmra.mrb[30].mxu1 %v748_v37 }
 0x12d   : > { %v749_v45 = vmax.f32 %v717_v41, 0.0  ;;  %v726_v41 = vadd.f32 %v2638_v5, %v2650_v16  ;;  %v731_v16 = vadd.f32 %v2638_v5, %v2685_v46  ;;  %v2763_v46 = vld [vmem:[%s3465_s4] ss:$0 sm:$0xff] }
 0x12e   : > { %v605_v47 = vpop.f32.mrb[34].mxu0 }
 0x12f   : > { %v718_v49 = vadd.f32 %v2638_v5, %v605_v47  ;;  %v2724_v51 = vpop.f32.mrb[35].mxu0  ;;  %2078 = vmatprep.mubr.f32.mxu1 %v749_v45  ;;  %v757_v47 = vmax.f32 %v725_v31, 0.0 }
 0x131   : > { %v750_v53 = vmax.f32 %v718_v49, 0.0  ;;  %v727_v49 = vadd.f32 %v2638_v5, %v2657_v22 }
 0x132   : > { %v611_v55 = vpop.f32.mrb[36].mxu0 }
 0x133   : > { %v719_v57 = vadd.f32 %v2638_v5, %v611_v55  ;;  %v2727_v58 = vpop.f32.mrb[37].mxu0  ;;  %2079 = vmatmul.mubr.f32.gmra.mrb[32].mxu1 %v750_v53  ;;  %v758_v53 = vmax.f32 %v726_v41, 0.0  ;;  %v759_v55 = vmax.f32 %v727_v49, 0.0 }
 0x135   : > { %v751_v59 = vmax.f32 %v719_v57, 0.0  ;;  %v729_v57 = vadd.f32 %v2638_v5, %v2671_v34 }
 0x136   : > { %v617_v61 = vpop.f32.mrb[38].mxu0 }
 0x137   : > { %v720_v62 = vadd.f32 %v2638_v5, %v617_v61  ;;  %v2730_v63 = vpop.f32.mrb[39].mxu0  ;;  %2081 = vmatprep.mubr.f32.mxu1 %v751_v59  ;;  %v760_v59 = vmax.f32 %v728_v11, 0.0  ;;  %v730_v61 = vadd.f32 %v2638_v5, %v2678_v40  ;;  %v761_v22 = vmax.f32 %v729_v57, 0.0 }
 0x139   : > { %v752_v1 = vmax.f32 %v720_v62, 0.0  ;;  %v732_v62 = vadd.f32 %v2638_v5, %v2692_v52  ;;  %v762_v28 = vmax.f32 %v730_v61, 0.0 }
 0x13a   : > { %v623_v2 = vpop.f32.mrb[40].mxu0 }
 0x13b   : > { %v721_v3 = vadd.f32 %v2638_v5, %v623_v2  ;;  %v2733_v6 = vpop.f32.mrb[41].mxu0  ;;  %2082 = vmatmul.mubr.f32.gmra.mrb[34].mxu1 %v752_v1  ;;  %v763_v1 = vmax.f32 %v731_v16, 0.0  ;;  %v764_v2 = vmax.f32 %v732_v62, 0.0 }
 0x13d   : > { %v753_v8 = vmax.f32 %v721_v3, 0.0 }
 0x13e   : > { %v629_v10 = vpop.f32.mrb[42].mxu0 }
 0x13f   : > { %v722_v7 = vadd.f32 %v2638_v5, %v629_v10  ;;  %v2736_v15 = vpop.f32.mrb[43].mxu0  ;;  %2084 = vmatprep.mubr.f32.mxu1 %v753_v8 }
 0x141   : > { %v754_v17 = vmax.f32 %v722_v7, 0.0 }
 0x142   : > { %v635_v21 = vpop.f32.mrb[44].mxu0 }
 0x143   : > { %v723_v23 = vadd.f32 %v2638_v5, %v635_v21  ;;  %v2739_v25 = vpop.f32.mrb[45].mxu0  ;;  %2085 = vmatmul.mubr.f32.gmra.mrb[36].mxu1 %v754_v17 }
 0x145   : > { %v755_v29 = vmax.f32 %v723_v23, 0.0 }
 0x146   : > { %v641_v33 = vpop.f32.mrb[46].mxu0 }
 0x147   : > { %v724_v37 = vadd.f32 %v2638_v5, %v641_v33  ;;  %v2744_v39 = vpop.f32.mrb[47].mxu0  ;;  %2087 = vmatprep.mubr.f32.mxu1 %v755_v29 }
 0x149   : > { %v756_v45 = vmax.f32 %v724_v37, 0.0 }
 0x14b   : > { %2088 = vmatmul.mubr.f32.gmra.mrb[38].mxu1 %v756_v45 }
 0x14c   : > { %2090 = vmatprep.mubr.f32.mxu1 %v757_v47 }
 0x14f   : > { %2091 = vmatmul.mubr.f32.gmra.mrb[40].mxu1 %v758_v53 }
 0x150   : > { %2093 = vmatprep.mubr.f32.mxu1 %v759_v55 }
 0x153   : > { %2094 = vmatmul.mubr.f32.gmra.mrb[42].mxu1 %v760_v59 }
 0x154   : > { %2096 = vmatprep.mubr.f32.mxu1 %v761_v22 }
 0x157   : > { %2097 = vmatmul.mubr.f32.gmra.mrb[44].mxu1 %v762_v28 }
 0x158   : > { %2099 = vmatprep.mubr.f32.mxu1 %v763_v1 }
 0x15b   : > { %2100 = vmatmul.mubr.f32.gmra.mrb[46].mxu1 %v764_v2 }
 0x1c6   : > { %v2056_v34 = vpop.f32.mrb[16].mxu1 }
 0x1c7   : > { %v853_v40 = vadd.f32 %v2056_v34, %v2648_v14  ;;  %v847_v3 = vpop.f32.mrb[17].mxu1 }
 0x1c8   : > { %v848_v8 = vadd.f32 %v847_v3, %v2641_v9 }
 0x1c9   : > { %v2768_v5 = vadd.f32 %v2763_v46, %v853_v40 }
 0x1ca   : > { %v2773_v10 = vadd.f32 %v2763_v46, %v848_v8 }
 0x1cb   : > { %v1048_v52 = vsel %vm340_vm0, %v2768_v5, 0.0 }
 0x1cc   : > { %1049 = vadd.xlane.f32.xlu0 %v1048_v52  ;;  %v1045_v14 = vsel %vm340_vm0, %v2773_v10, 0.0 }
 0x1ce   : > { %v2059_v7 = vpop.f32.mrb[18].mxu1 }
 0x1cf   : > { %v863_v17 = vadd.f32 %v2059_v7, %v2662_v26  ;;  %v857_v21 = vpop.f32.mrb[19].mxu1 }
 0x1d0   : > { %v858_v23 = vadd.f32 %v857_v21, %v2655_v20  ;;  %1046 = vadd.xlane.f32.xlu0 %v1045_v14 }
 0x1d1   : > { %v2780_v9 = vadd.f32 %v2763_v46, %v863_v17 }
 0x1d2   : > { %v2785_v31 = vadd.f32 %v2763_v46, %v858_v23 }
 0x1d3   : > { %v1054_v29 = vsel %vm340_vm0, %v2780_v9, 0.0 }
 0x1d4   : > { %1055 = vadd.xlane.f32.xlu1 %v1054_v29  ;;  %v1051_v41 = vsel %vm340_vm0, %v2785_v31, 0.0 }
 0x1d6   : > { %v2062_v33 = vpop.f32.mrb[20].mxu1 }
 0x1d7   : > { %v873_v26 = vadd.f32 %v2062_v33, %v2676_v38  ;;  %v867_v37 = vpop.f32.mrb[21].mxu1 }
 0x1d8   : > { %v868_v20 = vadd.f32 %v867_v37, %v2669_v32  ;;  %1052 = vadd.xlane.f32.xlu1 %v1051_v41 }
 0x1d9   : > { %v2792_v45 = vadd.f32 %v2763_v46, %v873_v26 }
 0x1da   : > { %v2795_v47 = vadd.f32 %v2763_v46, %v868_v20 }
 0x1db   : > { %v1060_v49 = vsel %vm340_vm0, %v2792_v45, 0.0 }
 0x1dc   : > { %1061 = vadd.xlane.f32.xlu1 %v1060_v49  ;;  %v1057_v38 = vsel %vm340_vm0, %v2795_v47, 0.0 }
 0x1dd   : > { %1058 = vadd.xlane.f32.xlu0 %v1057_v38 }
 0x1de   : > { %v2065_v53 = vpop.f32.mrb[22].mxu1 }
 0x1df   : > { %v883_v11 = vadd.f32 %v2065_v53, %v2690_v50  ;;  %v877_v55 = vpop.f32.mrb[23].mxu1 }
 0x1e0   : > { %v878_v32 = vadd.f32 %v877_v55, %v2683_v44 }
 0x1e1   : > { %v2804_v57 = vadd.f32 %v2763_v46, %v883_v11 }
 0x1e2   : > { %v2807_v16 = vadd.f32 %v2763_v46, %v878_v32 }
 0x1e3   : > { %v1066_v59 = vsel %vm340_vm0, %v2804_v57, 0.0 }
 0x1e4   : > { %1067 = vadd.xlane.f32.xlu1 %v1066_v59  ;;  %v1063_v61 = vsel %vm340_vm0, %v2807_v16, 0.0 }
 0x1e5   : > { %1064 = vadd.xlane.f32.xlu0 %v1063_v61 }
 0x1e6   : > { %v2068_v22 = vpop.f32.mrb[24].mxu1 }
 0x1e7   : > { %v893_v50 = vadd.f32 %v2068_v22, %v2700_v60  ;;  %v887_v62 = vpop.f32.mrb[25].mxu1 }
 0x1e8   : > { %v888_v44 = vadd.f32 %v887_v62, %v2697_v56 }
 0x1e9   : > { %v2816_v1 = vadd.f32 %v2763_v46, %v893_v50 }
 0x1ea   : > { %v2819_v28 = vadd.f32 %v2763_v46, %v888_v44 }
 0x1eb   : > { %v1072_v2 = vsel %vm340_vm0, %v2816_v1, 0.0 }
 0x1ec   : > { %1073 = vadd.xlane.f32.xlu1 %v1072_v2  ;;  %v1069_v34 = vsel %vm340_vm0, %v2819_v28, 0.0 }
 0x1ed   : > { %1070 = vadd.xlane.f32.xlu0 %v1069_v34 }
 0x1ee   : > { %v2071_v40 = vpop.f32.mrb[26].mxu1 }
 0x1ef   : > { %v903_v60 = vadd.f32 %v2071_v40, %v2706_v4  ;;  %v897_v3 = vpop.f32.mrb[27].mxu1 }
 0x1f0   : > { %v898_v56 = vadd.f32 %v897_v3, %v2703_v0 }
 0x1f1   : > { %v2828_v8 = vadd.f32 %v2763_v46, %v903_v60 }
 0x1f2   : > { %v2831_v52 = vadd.f32 %v2763_v46, %v898_v56 }
 0x1f3   : > { %v1078_v7 = vsel %vm340_vm0, %v2828_v8, 0.0 }
 0x1f4   : > { %1079 = vadd.xlane.f32.xlu1 %v1078_v7  ;;  %v1075_v17 = vsel %vm340_vm0, %v2831_v52, 0.0 }
 0x1f5   : > { %1076 = vadd.xlane.f32.xlu0 %v1075_v17 }
 0x1f6   : > { %v2074_v21 = vpop.f32.mrb[28].mxu1 }
 0x1f7   : > { %v913_v4 = vadd.f32 %v2074_v21, %v2712_v19  ;;  %v907_v14 = vpop.f32.mrb[29].mxu1 }
 0x1f8   : > { %v908_v0 = vadd.f32 %v907_v14, %v2709_v12 }
 0x1f9   : > { %v2840_v23 = vadd.f32 %v2763_v46, %v913_v4 }
 0x1fa   : > { %v2843_v29 = vadd.f32 %v2763_v46, %v908_v0 }
 0x1fb   : > { %v1084_v33 = vsel %vm340_vm0, %v2840_v23, 0.0 }
 0x1fc   : > { %1085 = vadd.xlane.f32.xlu1 %v1084_v33  ;;  %v1081_v26 = vsel %vm340_vm0, %v2843_v29, 0.0 }
 0x1fd   : > { %1082 = vadd.xlane.f32.xlu0 %v1081_v26 }
 0x1fe   : > { %v2077_v37 = vpop.f32.mrb[30].mxu1 }
 0x1ff   : > { %v923_v19 = vadd.f32 %v2077_v37, %v2718_v35  ;;  %v917_v41 = vpop.f32.mrb[31].mxu1 }
 0x200   : > { %v918_v12 = vadd.f32 %v917_v41, %v2715_v27 }
 0x201   : > { %v2852_v20 = vadd.f32 %v2763_v46, %v923_v19 }
 0x202   : > { %v2855_v49 = vadd.f32 %v2763_v46, %v918_v12 }
 0x203   : > { %v1090_v38 = vsel %vm340_vm0, %v2852_v20, 0.0 }
 0x204   : > { %1091 = vadd.xlane.f32.xlu1 %v1090_v38  ;;  %v1087_v53 = vsel %vm340_vm0, %v2855_v49, 0.0 }
 0x205   : > { %1088 = vadd.xlane.f32.xlu0 %v1087_v53 }
 0x206   : > { %v2080_v11 = vpop.f32.mrb[32].mxu1 }
 0x207   : > { %v933_v35 = vadd.f32 %v2080_v11, %v2724_v51  ;;  %v927_v55 = vpop.f32.mrb[33].mxu1 }
 0x208   : > { %v928_v27 = vadd.f32 %v927_v55, %v2721_v43 }
 0x209   : > { %v2864_v32 = vadd.f32 %v2763_v46, %v933_v35 }
 0x20a   : > { %v2867_v59 = vadd.f32 %v2763_v46, %v928_v27 }
 0x20b   : > { %v1096_v61 = vsel %vm340_vm0, %v2864_v32, 0.0 }
 0x20c   : > { %1097 = vadd.xlane.f32.xlu1 %v1096_v61  ;;  %v1093_v22 = vsel %vm340_vm0, %v2867_v59, 0.0 }
 0x20d   : > { %1094 = vadd.xlane.f32.xlu0 %v1093_v22 }
 0x20e   : > { %v2083_v50 = vpop.f32.mrb[34].mxu1 }
 0x20f   : > { %v943_v51 = vadd.f32 %v2083_v50, %v2730_v63  ;;  %v937_v62 = vpop.f32.mrb[35].mxu1 }
 0x210   : > { %v938_v43 = vadd.f32 %v937_v62, %v2727_v58 }
 0x211   : > { %v2876_v44 = vadd.f32 %v2763_v46, %v943_v51 }
 0x212   : > { %v2879_v2 = vadd.f32 %v2763_v46, %v938_v43 }
 0x213   : > { %v1102_v34 = vsel %vm340_vm0, %v2876_v44, 0.0 }
 0x214   : > { %1103 = vadd.xlane.f32.xlu1 %v1102_v34  ;;  %v1099_v40 = vsel %vm340_vm0, %v2879_v2, 0.0 }
 0x215   : > { %1100 = vadd.xlane.f32.xlu0 %v1099_v40 }
 0x216   : > { %v2086_v60 = vpop.f32.mrb[36].mxu1 }
 0x217   : > { %v953_v63 = vadd.f32 %v2086_v60, %v2736_v15  ;;  %v947_v3 = vpop.f32.mrb[37].mxu1 }
 0x218   : > { %v948_v58 = vadd.f32 %v947_v3, %v2733_v6 }
 0x219   : > { %v2888_v56 = vadd.f32 %v2763_v46, %v953_v63 }
 0x21a   : > { %v2891_v7 = vadd.f32 %v2763_v46, %v948_v58 }
 0x21b   : > { %v1108_v17 = vsel %vm340_vm0, %v2888_v56, 0.0 }
 0x21c   : > { %1109 = vadd.xlane.f32.xlu1 %v1108_v17  ;;  %v1105_v21 = vsel %vm340_vm0, %v2891_v7, 0.0 }
 0x21d   : > { %1106 = vadd.xlane.f32.xlu0 %v1105_v21 }
 0x21e   : > { %v2089_v4 = vpop.f32.mrb[38].mxu1 }
 0x21f   : > { %v963_v15 = vadd.f32 %v2089_v4, %v2744_v39  ;;  %v957_v14 = vpop.f32.mrb[39].mxu1 }
 0x220   : > { %v958_v6 = vadd.f32 %v957_v14, %v2739_v25 }
 0x221   : > { %v2900_v0 = vadd.f32 %v2763_v46, %v963_v15 }
 0x222   : > { %v2092_v33 = vpop.f32.mrb[40].mxu1  ;;  %v2903_v26 = vadd.f32 %v2763_v46, %v958_v6 }
 0x223   : > { %v973_v37 = vadd.f32 %v2092_v33, %v2652_v18  ;;  %v967_v19 = vpop.f32.mrb[41].mxu1  ;;  %v1114_v41 = vsel %vm340_vm0, %v2900_v0, 0.0 }
 0x224   : > { %v968_v12 = vadd.f32 %v967_v19, %v2645_v13  ;;  %1115 = vadd.xlane.f32.xlu1 %v1114_v41  ;;  %v1111_v39 = vsel %vm340_vm0, %v2903_v26, 0.0 }
 0x225   : > { %1112 = vadd.xlane.f32.xlu0 %v1111_v39  ;;  %v2912_v25 = vadd.f32 %v2763_v46, %v973_v37 }
 0x226   : > { %v2095_v38 = vpop.f32.mrb[42].mxu1  ;;  %v2915_v53 = vadd.f32 %v2763_v46, %v968_v12 }
 0x227   : > { %v983_v18 = vadd.f32 %v2095_v38, %v2666_v30  ;;  %v977_v11 = vpop.f32.mrb[43].mxu1  ;;  %v1120_v35 = vsel %vm340_vm0, %v2912_v25, 0.0 }
 0x228   : > { %v978_v13 = vadd.f32 %v977_v11, %v2659_v24  ;;  %1121 = vadd.xlane.f32.xlu1 %v1120_v35  ;;  %v1117_v55 = vsel %vm340_vm0, %v2915_v53, 0.0 }
 0x229   : > { %1118 = vadd.xlane.f32.xlu0 %v1117_v55  ;;  %v2924_v27 = vadd.f32 %v2763_v46, %v983_v18 }
 0x22a   : > { %v2098_v61 = vpop.f32.mrb[44].mxu1  ;;  %v2927_v22 = vadd.f32 %v2763_v46, %v978_v13 }
 0x22b   : > { %v993_v30 = vadd.f32 %v2098_v61, %v2680_v42  ;;  %v987_v50 = vpop.f32.mrb[45].mxu1  ;;  %v1126_v51 = vsel %vm340_vm0, %v2924_v27, 0.0 }
 0x22c   : > { %v988_v24 = vadd.f32 %v987_v50, %v2673_v36  ;;  %1127 = vadd.xlane.f32.xlu1 %v1126_v51  ;;  %v1123_v62 = vsel %vm340_vm0, %v2927_v22, 0.0 }
 0x22d   : > { %1124 = vadd.xlane.f32.xlu0 %v1123_v62  ;;  %v2936_v43 = vadd.f32 %v2763_v46, %v993_v30 }
 0x22e   : > { %v2101_v34 = vpop.f32.mrb[46].mxu1  ;;  %v2939_v40 = vadd.f32 %v2763_v46, %v988_v24 }
 0x22f   : > { %v1003_v42 = vadd.f32 %v2101_v34, %v2694_v54  ;;  %v997_v60 = vpop.f32.mrb[47].mxu1  ;;  %v1132_v63 = vsel %vm340_vm0, %v2936_v43, 0.0 }
 0x230   : > { %v998_v36 = vadd.f32 %v997_v60, %v2687_v48  ;;  %1133 = vadd.xlane.f32.xlu1 %v1132_v63  ;;  %v1129_v3 = vsel %vm340_vm0, %v2939_v40, 0.0 }
 0x231   : > { %1130 = vadd.xlane.f32.xlu0 %v1129_v3  ;;  %v2948_v58 = vadd.f32 %v2763_v46, %v1003_v42 }
 0x232   : > { %v2951_v17 = vadd.f32 %v2763_v46, %v998_v36 }
 0x233   : > { %v1138_v54 = vsel %vm340_vm0, %v2948_v58, 0.0 }
 0x234   : > { %1139 = vadd.xlane.f32.xlu1 %v1138_v54  ;;  %v1135_v21 = vsel %vm340_vm0, %v2951_v17, 0.0 }
 0x235   : > { %1136 = vadd.xlane.f32.xlu0 %v1135_v21 }
 0x259   : > { %v1050_v48 = vpop.xlane.xlu0 %1049 }
 0x25a   : > { %v1143_v4 = vmul.f32 0.03125, %v1050_v48 }
 0x25c   : > { %v2958_v15 = vsub.f32 %v2768_v5, %v1143_v4 }
 0x25d   : > { %v1047_v14 = vpop.xlane.xlu0 %1046 }
 0x25e   : > { %v1142_v6 = vmul.f32 0.03125, %v1047_v14  ;;  %v1207_v33 = vmul.f32 %v2958_v15, %v2958_v15 }
 0x260   : > { %v2963_v46 = vsub.f32 %v2773_v10, %v1142_v6  ;;  %v1241_v37 = vsel %vm340_vm0, %v1207_v33, 0.0 }
 0x261   : > { %v1056_v19 = vpop.xlane.xlu1 %1055  ;;  %1242 = vadd.xlane.f32.xlu1 %v1241_v37 }
 0x262   : > { %v1145_v41 = vmul.f32 0.03125, %v1056_v19  ;;  %v1206_v12 = vmul.f32 %v2963_v46, %v2963_v46 }
 0x264   : > { %v2969_v39 = vsub.f32 %v2780_v9, %v1145_v41  ;;  %v1238_v5 = vsel %vm340_vm0, %v1206_v12, 0.0 }
 0x265   : > { %v1053_v38 = vpop.xlane.xlu1 %1052  ;;  %1239 = vadd.xlane.f32.xlu0 %v1238_v5 }
 0x266   : > { %v1144_v18 = vmul.f32 0.03125, %v1053_v38  ;;  %v1209_v10 = vmul.f32 %v2969_v39, %v2969_v39 }
 0x268   : > { %v2975_v11 = vsub.f32 %v2785_v31, %v1144_v18  ;;  %v1247_v35 = vsel %vm340_vm0, %v1209_v10, 0.0 }
 0x269   : > { %v1062_v13 = vpop.xlane.xlu1 %1061  ;;  %1248 = vadd.xlane.f32.xlu1 %v1247_v35 }
 0x26a   : > { %v1147_v55 = vmul.f32 0.03125, %v1062_v13  ;;  %v1059_v61 = vpop.xlane.xlu0 %1058  ;;  %v1208_v9 = vmul.f32 %v2975_v11, %v2975_v11 }
 0x26b   : > { %v1146_v30 = vmul.f32 0.03125, %v1059_v61 }
 0x26c   : > { %v2981_v50 = vsub.f32 %v2792_v45, %v1147_v55  ;;  %v1244_v51 = vsel %vm340_vm0, %v1208_v9, 0.0 }
 0x26d   : > { %v2985_v24 = vsub.f32 %v2795_v47, %v1146_v30  ;;  %1245 = vadd.xlane.f32.xlu0 %v1244_v51 }
 0x26e   : > { %v1211_v31 = vmul.f32 %v2981_v50, %v2981_v50 }
 0x26f   : > { %v1210_v62 = vmul.f32 %v2985_v24, %v2985_v24 }
 0x270   : > { %v1253_v34 = vsel %vm340_vm0, %v1211_v31, 0.0 }
 0x271   : > { %v1068_v42 = vpop.xlane.xlu1 %1067  ;;  %1254 = vadd.xlane.f32.xlu1 %v1253_v34  ;;  %v1250_v60 = vsel %vm340_vm0, %v1210_v62, 0.0 }
 0x272   : > { %v1149_v45 = vmul.f32 0.03125, %v1068_v42  ;;  %v1065_v63 = vpop.xlane.xlu0 %1064  ;;  %1251 = vadd.xlane.f32.xlu0 %v1250_v60 }
 0x273   : > { %v1148_v36 = vmul.f32 0.03125, %v1065_v63 }
 0x274   : > { %v2994_v47 = vsub.f32 %v2804_v57, %v1149_v45 }
 0x275   : > { %v2997_v3 = vsub.f32 %v2807_v16, %v1148_v36 }
 0x276   : > { %v1213_v54 = vmul.f32 %v2994_v47, %v2994_v47 }
 0x277   : > { %v1212_v21 = vmul.f32 %v2997_v3, %v2997_v3 }
 0x278   : > { %v1259_v48 = vsel %vm340_vm0, %v1213_v54, 0.0 }
 0x279   : > { %v1074_v4 = vpop.xlane.xlu1 %1073  ;;  %1260 = vadd.xlane.f32.xlu1 %v1259_v48  ;;  %v1256_v14 = vsel %vm340_vm0, %v1212_v21, 0.0 }
 0x27a   : > { %v1151_v6 = vmul.f32 0.03125, %v1074_v4  ;;  %v1071_v33 = vpop.xlane.xlu0 %1070  ;;  %1257 = vadd.xlane.f32.xlu0 %v1256_v14 }
 0x27b   : > { %v1150_v57 = vmul.f32 0.03125, %v1071_v33 }
 0x27c   : > { %v3006_v37 = vsub.f32 %v2816_v1, %v1151_v6 }
 0x27d   : > { %v3009_v16 = vsub.f32 %v2819_v28, %v1150_v57 }
 0x27e   : > { %v1215_v19 = vmul.f32 %v3006_v37, %v3006_v37 }
 0x27f   : > { %v1214_v41 = vmul.f32 %v3009_v16, %v3009_v16 }
 0x280   : > { %v1265_v12 = vsel %vm340_vm0, %v1215_v19, 0.0 }
 0x281   : > { %v1080_v5 = vpop.xlane.xlu1 %1079  ;;  %1266 = vadd.xlane.f32.xlu1 %v1265_v12  ;;  %v1262_v38 = vsel %vm340_vm0, %v1214_v41, 0.0 }
 0x282   : > { %v1153_v18 = vmul.f32 0.03125, %v1080_v5  ;;  %v1077_v10 = vpop.xlane.xlu0 %1076  ;;  %1263 = vadd.xlane.f32.xlu0 %v1262_v38 }
 0x283   : > { %v1152_v1 = vmul.f32 0.03125, %v1077_v10 }
 0x284   : > { %v3018_v35 = vsub.f32 %v2828_v8, %v1153_v18 }
 0x285   : > { %v3021_v28 = vsub.f32 %v2831_v52, %v1152_v1 }
 0x286   : > { %v1217_v13 = vmul.f32 %v3018_v35, %v3018_v35 }
 0x287   : > { %v1216_v55 = vmul.f32 %v3021_v28, %v3021_v28 }
 0x288   : > { %v1271_v61 = vsel %vm340_vm0, %v1217_v13, 0.0 }
 0x289   : > { %v1086_v9 = vpop.xlane.xlu1 %1085  ;;  %1272 = vadd.xlane.f32.xlu1 %v1271_v61  ;;  %v1268_v30 = vsel %vm340_vm0, %v1216_v55, 0.0 }
 0x28a   : > { %v1155_v51 = vmul.f32 0.03125, %v1086_v9  ;;  %v1083_v31 = vpop.xlane.xlu0 %1082  ;;  %1269 = vadd.xlane.f32.xlu0 %v1268_v30 }
 0x28b   : > { %v1154_v8 = vmul.f32 0.03125, %v1083_v31 }
 0x28c   : > { %v3030_v62 = vsub.f32 %v2840_v23, %v1155_v51 }
 0x28d   : > { %v3033_v52 = vsub.f32 %v2843_v29, %v1154_v8 }
 0x28e   : > { %v1219_v34 = vmul.f32 %v3030_v62, %v3030_v62 }
 0x28f   : > { %v1218_v42 = vmul.f32 %v3033_v52, %v3033_v52 }
 0x290   : > { %v1277_v60 = vsel %vm340_vm0, %v1219_v34, 0.0 }
 0x291   : > { %v1092_v45 = vpop.xlane.xlu1 %1091  ;;  %1278 = vadd.xlane.f32.xlu1 %v1277_v60  ;;  %v1274_v63 = vsel %vm340_vm0, %v1218_v42, 0.0 }
 0x292   : > { %v1157_v36 = vmul.f32 0.03125, %v1092_v45  ;;  %v1089_v54 = vpop.xlane.xlu0 %1088  ;;  %1275 = vadd.xlane.f32.xlu0 %v1274_v63 }
 0x293   : > { %v1156_v23 = vmul.f32 0.03125, %v1089_v54 }
 0x294   : > { %v3042_v21 = vsub.f32 %v2852_v20, %v1157_v36 }
 0x295   : > { %v3045_v29 = vsub.f32 %v2855_v49, %v1156_v23 }
 0x296   : > { %v1221_v48 = vmul.f32 %v3042_v21, %v3042_v21 }
 0x297   : > { %v1220_v4 = vmul.f32 %v3045_v29, %v3045_v29 }
 0x298   : > { %v1283_v14 = vsel %vm340_vm0, %v1221_v48, 0.0 }
 0x299   : > { %v1098_v6 = vpop.xlane.xlu1 %1097  ;;  %1284 = vadd.xlane.f32.xlu1 %v1283_v14  ;;  %v1280_v33 = vsel %vm340_vm0, %v1220_v4, 0.0 }
 0x29a   : > { %v1159_v57 = vmul.f32 0.03125, %v1098_v6  ;;  %v1095_v19 = vpop.xlane.xlu0 %1094  ;;  %1281 = vadd.xlane.f32.xlu0 %v1280_v33 }
 0x29b   : > { %v1158_v20 = vmul.f32 0.03125, %v1095_v19 }
 0x29c   : > { %v3054_v41 = vsub.f32 %v2864_v32, %v1159_v57 }
 0x29d   : > { %v3057_v49 = vsub.f32 %v2867_v59, %v1158_v20 }
 0x29e   : > { %v1223_v12 = vmul.f32 %v3054_v41, %v3054_v41 }
 0x29f   : > { %v1222_v5 = vmul.f32 %v3057_v49, %v3057_v49 }
 0x2a0   : > { %v1289_v38 = vsel %vm340_vm0, %v1223_v12, 0.0 }
 0x2a1   : > { %v1104_v18 = vpop.xlane.xlu1 %1103  ;;  %1290 = vadd.xlane.f32.xlu1 %v1289_v38  ;;  %v1286_v10 = vsel %vm340_vm0, %v1222_v5, 0.0 }
 0x2a2   : > { %v1161_v1 = vmul.f32 0.03125, %v1104_v18  ;;  %v1101_v13 = vpop.xlane.xlu0 %1100  ;;  %1287 = vadd.xlane.f32.xlu0 %v1286_v10 }
 0x2a3   : > { %v1160_v32 = vmul.f32 0.03125, %v1101_v13 }
 0x2a4   : > { %v3066_v55 = vsub.f32 %v2876_v44, %v1161_v1 }
 0x2a5   : > { %v3069_v59 = vsub.f32 %v2879_v2, %v1160_v32 }
 0x2a6   : > { %v1225_v61 = vmul.f32 %v3066_v55, %v3066_v55 }
 0x2a7   : > { %v1224_v9 = vmul.f32 %v3069_v59, %v3069_v59 }
 0x2a8   : > { %v1295_v30 = vsel %vm340_vm0, %v1225_v61, 0.0 }
 0x2a9   : > { %v1110_v51 = vpop.xlane.xlu1 %1109  ;;  %1296 = vadd.xlane.f32.xlu1 %v1295_v30  ;;  %v1292_v31 = vsel %vm340_vm0, %v1224_v9, 0.0 }
 0x2aa   : > { %v1163_v8 = vmul.f32 0.03125, %v1110_v51  ;;  %v1107_v34 = vpop.xlane.xlu0 %1106  ;;  %1293 = vadd.xlane.f32.xlu0 %v1292_v31 }
 0x2ab   : > { %v1162_v44 = vmul.f32 0.03125, %v1107_v34 }
 0x2ac   : > { %v3078_v42 = vsub.f32 %v2888_v56, %v1163_v8 }
 0x2ad   : > { %v3081_v2 = vsub.f32 %v2891_v7, %v1162_v44 }
 0x2ae   : > { %v1227_v60 = vmul.f32 %v3078_v42, %v3078_v42 }
 0x2af   : > { %v1226_v45 = vmul.f32 %v3081_v2, %v3081_v2 }
 0x2b0   : > { %v1301_v63 = vsel %vm340_vm0, %v1227_v60, 0.0 }
 0x2b1   : > { %1302 = vadd.xlane.f32.xlu1 %v1301_v63  ;;  %v1116_v36 = vpop.xlane.xlu1 %1115  ;;  %v1298_v54 = vsel %vm340_vm0, %v1226_v45, 0.0 }
 0x2b2   : > { %v1165_v23 = vmul.f32 0.03125, %v1116_v36  ;;  %1299 = vadd.xlane.f32.xlu0 %v1298_v54  ;;  %v1113_v48 = vpop.xlane.xlu0 %1112 }
 0x2b3   : > { %v1164_v56 = vmul.f32 0.03125, %v1113_v48 }
 0x2b4   : > { %v3090_v4 = vsub.f32 %v2900_v0, %v1165_v23 }
 0x2b5   : > { %v3093_v7 = vsub.f32 %v2903_v26, %v1164_v56  ;;  %v1122_v14 = vpop.xlane.xlu1 %1121 }
 0x2b6   : > { %v1167_v6 = vmul.f32 0.03125, %v1122_v14  ;;  %v1119_v33 = vpop.xlane.xlu0 %1118  ;;  %v1229_v57 = vmul.f32 %v3090_v4, %v3090_v4 }
 0x2b7   : > { %v1166_v19 = vmul.f32 0.03125, %v1119_v33  ;;  %v1228_v20 = vmul.f32 %v3093_v7, %v3093_v7 }
 0x2b8   : > { %v3100_v12 = vsub.f32 %v2912_v25, %v1167_v6  ;;  %v1307_v5 = vsel %vm340_vm0, %v1229_v57, 0.0 }
 0x2b9   : > { %v3104_v0 = vsub.f32 %v2915_v53, %v1166_v19  ;;  %1308 = vadd.xlane.f32.xlu1 %v1307_v5  ;;  %v1128_v26 = vpop.xlane.xlu1 %1127  ;;  %v1304_v38 = vsel %vm340_vm0, %v1228_v20, 0.0 }
 0x2ba   : > { %v1169_v18 = vmul.f32 0.03125, %v1128_v26  ;;  %1305 = vadd.xlane.f32.xlu0 %v1304_v38  ;;  %v1125_v10 = vpop.xlane.xlu0 %1124  ;;  %v1231_v1 = vmul.f32 %v3100_v12, %v3100_v12 }
 0x2bb   : > { %v1168_v13 = vmul.f32 0.03125, %v1125_v10  ;;  %v1230_v25 = vmul.f32 %v3104_v0, %v3104_v0 }
 0x2bc   : > { %v3112_v32 = vsub.f32 %v2924_v27, %v1169_v18  ;;  %v1313_v53 = vsel %vm340_vm0, %v1231_v1, 0.0 }
 0x2bd   : > { %v3116_v61 = vsub.f32 %v2927_v22, %v1168_v13  ;;  %1314 = vadd.xlane.f32.xlu1 %v1313_v53  ;;  %v1134_v9 = vpop.xlane.xlu1 %1133  ;;  %v1310_v30 = vsel %vm340_vm0, %v1230_v25, 0.0  ;;  %v3152_v53 = vld [vmem:[%s3466_s5] ss:$0 sm:$0xff] }
 0x2be   : > { %v1171_v51 = vmul.f32 0.03125, %v1134_v9  ;;  %1311 = vadd.xlane.f32.xlu0 %v1310_v30  ;;  %v1131_v31 = vpop.xlane.xlu0 %1130  ;;  %v1233_v8 = vmul.f32 %v3112_v32, %v3112_v32 }
 0x2bf   : > { %v1170_v34 = vmul.f32 0.03125, %v1131_v31  ;;  %v1232_v27 = vmul.f32 %v3116_v61, %v3116_v61 }
 0x2c0   : > { %v3124_v44 = vsub.f32 %v2936_v43, %v1171_v51  ;;  %v1319_v22 = vsel %vm340_vm0, %v1233_v8, 0.0 }
 0x2c1   : > { %v3128_v60 = vsub.f32 %v2939_v40, %v1170_v34  ;;  %1320 = vadd.xlane.f32.xlu1 %v1319_v22  ;;  %v1140_v45 = vpop.xlane.xlu1 %1139  ;;  %v1316_v63 = vsel %vm340_vm0, %v1232_v27, 0.0  ;;  %v3159_v34 = vld [vmem:[%s3467_s6] ss:$0 sm:$0xff] }
 0x2c2   : > { %v1173_v36 = vmul.f32 0.03125, %v1140_v45  ;;  %1317 = vadd.xlane.f32.xlu0 %v1316_v63  ;;  %v1137_v54 = vpop.xlane.xlu0 %1136  ;;  %v1235_v23 = vmul.f32 %v3124_v44, %v3124_v44 }
 0x2c3   : > { %v1172_v48 = vmul.f32 0.03125, %v1137_v54  ;;  %v1234_v43 = vmul.f32 %v3128_v60, %v3128_v60 }
 0x2c4   : > { %v3136_v56 = vsub.f32 %v2948_v58, %v1173_v36  ;;  %v1325_v40 = vsel %vm340_vm0, %v1235_v23, 0.0 }
 0x2c5   : > { %v3140_v14 = vsub.f32 %v2951_v17, %v1172_v48  ;;  %1326 = vadd.xlane.f32.xlu1 %v1325_v40  ;;  %v1322_v6 = vsel %vm340_vm0, %v1234_v43, 0.0 }
 0x2c6   : > { %1323 = vadd.xlane.f32.xlu0 %v1322_v6  ;;  %v1237_v33 = vmul.f32 %v3136_v56, %v3136_v56 }
 0x2c7   : > { %v1236_v57 = vmul.f32 %v3140_v14, %v3140_v14 }
 0x2c8   : > { %v1331_v19 = vsel %vm340_vm0, %v1237_v33, 0.0 }
 0x2c9   : > { %1332 = vadd.xlane.f32.xlu1 %v1331_v19  ;;  %v1328_v58 = vsel %vm340_vm0, %v1236_v57, 0.0 }
 0x2ca   : > { %1329 = vadd.xlane.f32.xlu0 %v1328_v58 }
 0x2ee   : > { %v1243_v20 = vpop.xlane.xlu1 %1242 }
 0x2ef   : > { %v1335_v17 = vmul.f32 0.03125, %v1243_v20 }
 0x2f1   : > { %v1367_v5 = vadd.f32 1e-05, %v1335_v17 }
 0x2f2   : > { %v1240_v26 = vpop.xlane.xlu0 %1239 }
 0x2f3   : > { %2235 = vrsqrt.f32 %v1367_v5  ;;  %v1334_v38 = vmul.f32 0.03125, %v1240_v26 }
 0x2f5   : > { %v1366_v18 = vadd.f32 1e-05, %v1334_v38 }
 0x2f6   : > { %v1249_v10 = vpop.xlane.xlu1 %1248 }
 0x2f7   : > { %2237 = vrsqrt.f32 %v1366_v18  ;;  %v1337_v1 = vmul.f32 0.03125, %v1249_v10 }
 0x2f9   : > { %v1369_v13 = vadd.f32 1e-05, %v1337_v1 }
 0x2fa   : > { %v1246_v25 = vpop.xlane.xlu0 %1245 }
 0x2fb   : > { %2239 = vrsqrt.f32 %v1369_v13  ;;  %v1336_v9 = vmul.f32 0.03125, %v1246_v25 }
 0x2fd   : > { %v2236_v30 = vpop.eup %2235  ;;  %v1368_v51 = vadd.f32 1e-05, %v1336_v9 }
 0x2fe   : > { %v1438_v31 = vmul.f32 %v2236_v30, %v3152_v53  ;;  %v1255_v8 = vpop.xlane.xlu1 %1254 }
 0x2ff   : > { %2241 = vrsqrt.f32 %v1368_v51  ;;  %v1339_v27 = vmul.f32 0.03125, %v1255_v8  ;;  %v1252_v22 = vpop.xlane.xlu0 %1251 }
 0x300   : > { %v1470_v45 = vmul.f32 %v1438_v31, %v2958_v15  ;;  %v1338_v63 = vmul.f32 0.03125, %v1252_v22 }
 0x301   : > { %v2238_v36 = vpop.eup %2237  ;;  %v1371_v54 = vadd.f32 1e-05, %v1339_v27 }
 0x302   : > { %v1509_v23 = vadd.f32 %v3159_v34, %v1470_v45  ;;  %v1437_v48 = vmul.f32 %v2238_v36, %v3152_v53  ;;  %v1370_v43 = vadd.f32 1e-05, %v1338_v63 }
 0x303   : > { %2243 = vrsqrt.f32 %v1371_v54 }
 0x304   : > { %1541 = vst.msk [vmem:[%s3164_s24 + $0x8] sm:$0xff] %vm340_vm0, %v1509_v23  ;;  %v1469_v40 = vmul.f32 %v1437_v48, %v2963_v46  ;;  %2245 = vrsqrt.f32 %v1370_v43 }
 0x305   : > { %v2240_v15 = vpop.eup %2239 }
 0x306   : > { %v1508_v6 = vadd.f32 %v3159_v34, %v1469_v40  ;;  %v1440_v33 = vmul.f32 %v2240_v15, %v3152_v53  ;;  %v1261_v57 = vpop.xlane.xlu1 %1260 }
 0x307   : > { %v1341_v19 = vmul.f32 0.03125, %v1261_v57  ;;  %v1258_v58 = vpop.xlane.xlu0 %1257 }
 0x308   : > { %1540 = vst.msk [vmem:[%s3164_s24] sm:$0xff] %vm340_vm0, %v1508_v6  ;;  %v1472_v20 = vmul.f32 %v1440_v33, %v2969_v39  ;;  %v1340_v17 = vmul.f32 0.03125, %v1258_v58 }
 0x309   : > { %v2242_v5 = vpop.eup %2241  ;;  %v1373_v26 = vadd.f32 1e-05, %v1341_v19 }
 0x30a   : > { %v1511_v46 = vadd.f32 %v3159_v34, %v1472_v20  ;;  %v1439_v38 = vmul.f32 %v2242_v5, %v3152_v53  ;;  %v1372_v18 = vadd.f32 1e-05, %v1340_v17 }
 0x30b   : > { %2247 = vrsqrt.f32 %v1373_v26 }
 0x30c   : > { %1543 = vst.msk [vmem:[%s3164_s24 + $0x18] sm:$0xff] %vm340_vm0, %v1511_v46  ;;  %v1471_v10 = vmul.f32 %v1439_v38, %v2975_v11  ;;  %2249 = vrsqrt.f32 %v1372_v18 }
 0x30d   : > { %v2244_v1 = vpop.eup %2243 }
 0x30e   : > { %v2246_v13 = vpop.eup %2245  ;;  %v1510_v39 = vadd.f32 %v3159_v34, %v1471_v10  ;;  %v1442_v25 = vmul.f32 %v2244_v1, %v3152_v53  ;;  %v1267_v9 = vpop.xlane.xlu1 %1266 }
 0x30f   : > { %v1441_v30 = vmul.f32 %v2246_v13, %v3152_v53  ;;  %v1343_v51 = vmul.f32 0.03125, %v1267_v9  ;;  %v1264_v31 = vpop.xlane.xlu0 %1263 }
 0x310   : > { %1542 = vst.msk [vmem:[%s3164_s24 + $0x10] sm:$0xff] %vm340_vm0, %v1510_v39  ;;  %v1474_v8 = vmul.f32 %v1442_v25, %v2981_v50  ;;  %v1342_v27 = vmul.f32 0.03125, %v1264_v31 }
 0x311   : > { %v1473_v11 = vmul.f32 %v1441_v30, %v2985_v24  ;;  %v1375_v22 = vadd.f32 1e-05, %v1343_v51 }
 0x312   : > { %v1513_v45 = vadd.f32 %v3159_v34, %v1474_v8  ;;  %v1374_v63 = vadd.f32 1e-05, %v1342_v27 }
 0x313   : > { %v1512_v36 = vadd.f32 %v3159_v34, %v1473_v11  ;;  %2251 = vrsqrt.f32 %v1375_v22 }
 0x314   : > { %1545 = vst.msk [vmem:[%s3164_s24 + $0x28] sm:$0xff] %vm340_vm0, %v1513_v45  ;;  %2253 = vrsqrt.f32 %v1374_v63 }
 0x315   : > { %v2248_v54 = vpop.eup %2247  ;;  %1544 = vst.msk [vmem:[%s3164_s24 + $0x20] sm:$0xff] %vm340_vm0, %v1512_v36 }
 0x316   : > { %v2250_v23 = vpop.eup %2249  ;;  %v1444_v50 = vmul.f32 %v2248_v54, %v3152_v53  ;;  %v1273_v48 = vpop.xlane.xlu1 %1272 }
 0x317   : > { %v1443_v24 = vmul.f32 %v2250_v23, %v3152_v53  ;;  %v1345_v43 = vmul.f32 0.03125, %v1273_v48  ;;  %v1270_v40 = vpop.xlane.xlu0 %1269 }
 0x318   : > { %v1476_v15 = vmul.f32 %v1444_v50, %v2994_v47  ;;  %v1344_v6 = vmul.f32 0.03125, %v1270_v40 }
 0x319   : > { %v1475_v33 = vmul.f32 %v1443_v24, %v2997_v3  ;;  %v1377_v57 = vadd.f32 1e-05, %v1345_v43 }
 0x31a   : > { %v1515_v19 = vadd.f32 %v3159_v34, %v1476_v15  ;;  %v1376_v58 = vadd.f32 1e-05, %v1344_v6 }
 0x31b   : > { %v1514_v20 = vadd.f32 %v3159_v34, %v1475_v33  ;;  %2255 = vrsqrt.f32 %v1377_v57 }
 0x31c   : > { %1547 = vst.msk [vmem:[%s3164_s24 + $0x38] sm:$0xff] %vm340_vm0, %v1515_v19  ;;  %2257 = vrsqrt.f32 %v1376_v58 }
 0x31d   : > { %v2252_v17 = vpop.eup %2251  ;;  %1546 = vst.msk [vmem:[%s3164_s24 + $0x30] sm:$0xff] %vm340_vm0, %v1514_v20 }
 0x31e   : > { %v2254_v5 = vpop.eup %2253  ;;  %v1446_v47 = vmul.f32 %v2252_v17, %v3152_v53  ;;  %v1279_v26 = vpop.xlane.xlu1 %1278 }
 0x31f   : > { %v1445_v3 = vmul.f32 %v2254_v5, %v3152_v53  ;;  %v1347_v46 = vmul.f32 0.03125, %v1279_v26  ;;  %v1276_v38 = vpop.xlane.xlu0 %1275 }
 0x320   : > { %v1478_v18 = vmul.f32 %v1446_v47, %v3006_v37  ;;  %v1346_v10 = vmul.f32 0.03125, %v1276_v38 }
 0x321   : > { %v1477_v1 = vmul.f32 %v1445_v3, %v3009_v16  ;;  %v1379_v13 = vadd.f32 1e-05, %v1347_v46 }
 0x322   : > { %v1517_v39 = vadd.f32 %v3159_v34, %v1478_v18  ;;  %v1378_v25 = vadd.f32 1e-05, %v1346_v10 }
 0x323   : > { %v1516_v9 = vadd.f32 %v3159_v34, %v1477_v1  ;;  %2259 = vrsqrt.f32 %v1379_v13 }
 0x324   : > { %1549 = vst.msk [vmem:[%s3164_s24 + $0x48] sm:$0xff] %vm340_vm0, %v1517_v39  ;;  %2261 = vrsqrt.f32 %v1378_v25 }
 0x325   : > { %v2256_v30 = vpop.eup %2255  ;;  %1548 = vst.msk [vmem:[%s3164_s24 + $0x40] sm:$0xff] %vm340_vm0, %v1516_v9 }
 0x326   : > { %v2258_v51 = vpop.eup %2257  ;;  %v1448_v37 = vmul.f32 %v2256_v30, %v3152_v53  ;;  %v1285_v31 = vpop.xlane.xlu1 %1284 }
 0x327   : > { %v1447_v16 = vmul.f32 %v2258_v51, %v3152_v53  ;;  %v1349_v8 = vmul.f32 0.03125, %v1285_v31  ;;  %v1282_v27 = vpop.xlane.xlu0 %1281 }
 0x328   : > { %v1480_v11 = vmul.f32 %v1448_v37, %v3018_v35  ;;  %v1348_v22 = vmul.f32 0.03125, %v1282_v27 }
 0x329   : > { %v1479_v45 = vmul.f32 %v1447_v16, %v3021_v28  ;;  %v1381_v63 = vadd.f32 1e-05, %v1349_v8 }
 0x32a   : > { %v1519_v36 = vadd.f32 %v3159_v34, %v1480_v11  ;;  %v1380_v54 = vadd.f32 1e-05, %v1348_v22 }
 0x32b   : > { %v1518_v23 = vadd.f32 %v3159_v34, %v1479_v45  ;;  %2263 = vrsqrt.f32 %v1381_v63 }
 0x32c   : > { %1551 = vst.msk [vmem:[%s3164_s24 + $0x58] sm:$0xff] %vm340_vm0, %v1519_v36  ;;  %2265 = vrsqrt.f32 %v1380_v54 }
 0x32d   : > { %v2260_v50 = vpop.eup %2259  ;;  %1550 = vst.msk [vmem:[%s3164_s24 + $0x50] sm:$0xff] %vm340_vm0, %v1518_v23 }
 0x32e   : > { %v2262_v48 = vpop.eup %2261  ;;  %v1450_v35 = vmul.f32 %v2260_v50, %v3152_v53  ;;  %v1291_v24 = vpop.xlane.xlu1 %1290 }
 0x32f   : > { %v1449_v28 = vmul.f32 %v2262_v48, %v3152_v53  ;;  %v1351_v43 = vmul.f32 0.03125, %v1291_v24  ;;  %v1288_v40 = vpop.xlane.xlu0 %1287 }
 0x330   : > { %v1482_v15 = vmul.f32 %v1450_v35, %v3030_v62  ;;  %v1350_v6 = vmul.f32 0.03125, %v1288_v40 }
 0x331   : > { %v1481_v33 = vmul.f32 %v1449_v28, %v3033_v52  ;;  %v1383_v57 = vadd.f32 1e-05, %v1351_v43 }
 0x332   : > { %v1521_v19 = vadd.f32 %v3159_v34, %v1482_v15  ;;  %v1382_v58 = vadd.f32 1e-05, %v1350_v6 }
 0x333   : > { %v1520_v20 = vadd.f32 %v3159_v34, %v1481_v33  ;;  %2267 = vrsqrt.f32 %v1383_v57 }
 0x334   : > { %1553 = vst.msk [vmem:[%s3164_s24 + $0x68] sm:$0xff] %vm340_vm0, %v1521_v19  ;;  %2269 = vrsqrt.f32 %v1382_v58 }
 0x335   : > { %v2264_v17 = vpop.eup %2263  ;;  %1552 = vst.msk [vmem:[%s3164_s24 + $0x60] sm:$0xff] %vm340_vm0, %v1520_v20 }
 0x336   : > { %v2266_v5 = vpop.eup %2265  ;;  %v1452_v62 = vmul.f32 %v2264_v17, %v3152_v53  ;;  %v1297_v47 = vpop.xlane.xlu1 %1296 }
 0x337   : > { %v1451_v52 = vmul.f32 %v2266_v5, %v3152_v53  ;;  %v1353_v26 = vmul.f32 0.03125, %v1297_v47  ;;  %v1294_v3 = vpop.xlane.xlu0 %1293 }
 0x338   : > { %v1484_v46 = vmul.f32 %v1452_v62, %v3042_v21  ;;  %v1352_v38 = vmul.f32 0.03125, %v1294_v3 }
 0x339   : > { %v1483_v18 = vmul.f32 %v1451_v52, %v3045_v29  ;;  %v1385_v10 = vadd.f32 1e-05, %v1353_v26 }
 0x33a   : > { %v1523_v1 = vadd.f32 %v3159_v34, %v1484_v46  ;;  %v1384_v13 = vadd.f32 1e-05, %v1352_v38 }
 0x33b   : > { %v1522_v39 = vadd.f32 %v3159_v34, %v1483_v18  ;;  %2271 = vrsqrt.f32 %v1385_v10 }
 0x33c   : > { %1555 = vst.msk [vmem:[%s3164_s24 + $0x78] sm:$0xff] %vm340_vm0, %v1523_v1  ;;  %2273 = vrsqrt.f32 %v1384_v13 }
 0x33d   : > { %v2268_v25 = vpop.eup %2267  ;;  %1554 = vst.msk [vmem:[%s3164_s24 + $0x70] sm:$0xff] %vm340_vm0, %v1522_v39 }
 0x33e   : > { %v2270_v9 = vpop.eup %2269  ;;  %v1454_v21 = vmul.f32 %v2268_v25, %v3152_v53  ;;  %v1303_v30 = vpop.xlane.xlu1 %1302 }
 0x33f   : > { %v1453_v29 = vmul.f32 %v2270_v9, %v3152_v53  ;;  %v1355_v51 = vmul.f32 0.03125, %v1303_v30  ;;  %v1300_v37 = vpop.xlane.xlu0 %1299 }
 0x340   : > { %v1486_v31 = vmul.f32 %v1454_v21, %v3054_v41  ;;  %v1354_v16 = vmul.f32 0.03125, %v1300_v37 }
 0x341   : > { %v1485_v8 = vmul.f32 %v1453_v29, %v3057_v49  ;;  %v1387_v27 = vadd.f32 1e-05, %v1355_v51 }
 0x342   : > { %v1525_v11 = vadd.f32 %v3159_v34, %v1486_v31  ;;  %v1386_v22 = vadd.f32 1e-05, %v1354_v16 }
 0x343   : > { %v1524_v45 = vadd.f32 %v3159_v34, %v1485_v8  ;;  %2275 = vrsqrt.f32 %v1387_v27 }
 0x344   : > { %1557 = vst.msk [vmem:[%s3164_s24 + $0x88] sm:$0xff] %vm340_vm0, %v1525_v11  ;;  %2277 = vrsqrt.f32 %v1386_v22 }
 0x345   : > { %v2272_v63 = vpop.eup %2271  ;;  %1556 = vst.msk [vmem:[%s3164_s24 + $0x80] sm:$0xff] %vm340_vm0, %v1524_v45 }
 0x346   : > { %v2274_v36 = vpop.eup %2273  ;;  %v1456_v54 = vmul.f32 %v2272_v63, %v3152_v53  ;;  %v1309_v41 = vpop.xlane.xlu1 %1308 }
 0x347   : > { %v1455_v49 = vmul.f32 %v2274_v36, %v3152_v53  ;;  %v1357_v23 = vmul.f32 0.03125, %v1309_v41  ;;  %v1306_v50 = vpop.xlane.xlu0 %1305 }
 0x348   : > { %v1488_v48 = vmul.f32 %v1456_v54, %v3066_v55  ;;  %v1356_v35 = vmul.f32 0.03125, %v1306_v50 }
 0x349   : > { %v1487_v24 = vmul.f32 %v1455_v49, %v3069_v59  ;;  %v1389_v28 = vadd.f32 1e-05, %v1357_v23 }
 0x34a   : > { %v1527_v43 = vadd.f32 %v3159_v34, %v1488_v48  ;;  %v1388_v40 = vadd.f32 1e-05, %v1356_v35  ;;  %v1315_v15 = vpop.xlane.xlu1 %1314 }
 0x34b   : > { %v1526_v6 = vadd.f32 %v3159_v34, %v1487_v24  ;;  %2279 = vrsqrt.f32 %v1389_v28  ;;  %v1359_v33 = vmul.f32 0.03125, %v1315_v15  ;;  %v1312_v57 = vpop.xlane.xlu0 %1311 }
 0x34c   : > { %1559 = vst.msk [vmem:[%s3164_s24 + $0x98] sm:$0xff] %vm340_vm0, %v1527_v43  ;;  %2281 = vrsqrt.f32 %v1388_v40  ;;  %v1358_v19 = vmul.f32 0.03125, %v1312_v57 }
 0x34d   : > { %v2276_v58 = vpop.eup %2275  ;;  %1558 = vst.msk [vmem:[%s3164_s24 + $0x90] sm:$0xff] %vm340_vm0, %v1526_v6  ;;  %v1391_v55 = vadd.f32 1e-05, %v1359_v33 }
 0x34e   : > { %v2278_v20 = vpop.eup %2277  ;;  %v1458_v59 = vmul.f32 %v2276_v58, %v3152_v53  ;;  %v1390_v17 = vadd.f32 1e-05, %v1358_v19  ;;  %v1321_v5 = vpop.xlane.xlu1 %1320 }
 0x34f   : > { %v1457_v62 = vmul.f32 %v2278_v20, %v3152_v53  ;;  %2283 = vrsqrt.f32 %v1391_v55  ;;  %v1361_v47 = vmul.f32 0.03125, %v1321_v5  ;;  %v1318_v52 = vpop.xlane.xlu0 %1317 }
 0x350   : > { %v1490_v26 = vmul.f32 %v1458_v59, %v3078_v42  ;;  %2285 = vrsqrt.f32 %v1390_v17  ;;  %v1360_v3 = vmul.f32 0.03125, %v1318_v52 }
 0x351   : > { %v1489_v46 = vmul.f32 %v1457_v62, %v3081_v2  ;;  %v1393_v38 = vadd.f32 1e-05, %v1361_v47 }
 0x352   : > { %v1529_v18 = vadd.f32 %v3159_v34, %v1490_v26  ;;  %v1392_v10 = vadd.f32 1e-05, %v1360_v3  ;;  %v1327_v1 = vpop.xlane.xlu1 %1326 }
 0x353   : > { %v1528_v13 = vadd.f32 %v3159_v34, %v1489_v46  ;;  %2287 = vrsqrt.f32 %v1393_v38  ;;  %v1363_v39 = vmul.f32 0.03125, %v1327_v1  ;;  %v1324_v25 = vpop.xlane.xlu0 %1323 }
 0x354   : > { %1561 = vst.msk [vmem:[%s3164_s24 + $0xa8] sm:$0xff] %vm340_vm0, %v1529_v18  ;;  %2289 = vrsqrt.f32 %v1392_v10  ;;  %v1362_v9 = vmul.f32 0.03125, %v1324_v25 }
 0x355   : > { %v2280_v42 = vpop.eup %2279  ;;  %1560 = vst.msk [vmem:[%s3164_s24 + $0xa0] sm:$0xff] %vm340_vm0, %v1528_v13  ;;  %v1395_v21 = vadd.f32 1e-05, %v1363_v39 }
 0x356   : > { %v2282_v30 = vpop.eup %2281  ;;  %v1460_v2 = vmul.f32 %v2280_v42, %v3152_v53  ;;  %v1394_v29 = vadd.f32 1e-05, %v1362_v9  ;;  %v1333_v51 = vpop.xlane.xlu1 %1332 }
 0x357   : > { %v1459_v37 = vmul.f32 %v2282_v30, %v3152_v53  ;;  %2291 = vrsqrt.f32 %v1395_v21  ;;  %v1365_v31 = vmul.f32 0.03125, %v1333_v51  ;;  %v1330_v16 = vpop.xlane.xlu0 %1329 }
 0x358   : > { %v1492_v8 = vmul.f32 %v1460_v2, %v3090_v4  ;;  %2293 = vrsqrt.f32 %v1394_v29  ;;  %v1364_v27 = vmul.f32 0.03125, %v1330_v16 }
 0x359   : > { %v2284_v11 = vpop.eup %2283  ;;  %v1491_v22 = vmul.f32 %v1459_v37, %v3093_v7  ;;  %v1397_v45 = vadd.f32 1e-05, %v1365_v31 }
 0x35a   : > { %v2286_v63 = vpop.eup %2285  ;;  %v1531_v36 = vadd.f32 %v3159_v34, %v1492_v8  ;;  %v1462_v54 = vmul.f32 %v2284_v11, %v3152_v53  ;;  %v1396_v41 = vadd.f32 1e-05, %v1364_v27 }
 0x35b   : > { %v1530_v49 = vadd.f32 %v3159_v34, %v1491_v22  ;;  %v1461_v23 = vmul.f32 %v2286_v63, %v3152_v53  ;;  %2295 = vrsqrt.f32 %v1397_v45 }
 0x35c   : > { %1563 = vst.msk [vmem:[%s3164_s24 + $0xb8] sm:$0xff] %vm340_vm0, %v1531_v36  ;;  %v1494_v4 = vmul.f32 %v1462_v54, %v3100_v12  ;;  %2297 = vrsqrt.f32 %v1396_v41 }
 0x35d   : > { %v2288_v7 = vpop.eup %2287  ;;  %1562 = vst.msk [vmem:[%s3164_s24 + $0xb0] sm:$0xff] %vm340_vm0, %v1530_v49  ;;  %v1493_v50 = vmul.f32 %v1461_v23, %v3104_v0 }
 0x35e   : > { %v2290_v48 = vpop.eup %2289  ;;  %v1533_v35 = vadd.f32 %v3159_v34, %v1494_v4  ;;  %v1464_v24 = vmul.f32 %v2288_v7, %v3152_v53 }
 0x35f   : > { %v1532_v28 = vadd.f32 %v3159_v34, %v1493_v50  ;;  %v1463_v43 = vmul.f32 %v2290_v48, %v3152_v53 }
 0x360   : > { %1565 = vst.msk [vmem:[%s3164_s24 + $0xc8] sm:$0xff] %vm340_vm0, %v1533_v35  ;;  %v1496_v12 = vmul.f32 %v1464_v24, %v3112_v32 }
 0x361   : > { %v2292_v40 = vpop.eup %2291  ;;  %1564 = vst.msk [vmem:[%s3164_s24 + $0xc0] sm:$0xff] %vm340_vm0, %v1532_v28  ;;  %v1495_v0 = vmul.f32 %v1463_v43, %v3116_v61 }
 0x362   : > { %v2294_v15 = vpop.eup %2293  ;;  %v1535_v6 = vadd.f32 %v3159_v34, %v1496_v12  ;;  %v1466_v33 = vmul.f32 %v2292_v40, %v3152_v53 }
 0x363   : > { %v1534_v57 = vadd.f32 %v3159_v34, %v1495_v0  ;;  %v1465_v19 = vmul.f32 %v2294_v15, %v3152_v53 }
 0x364   : > { %1567 = vst.msk [vmem:[%s3164_s24 + $0xd8] sm:$0xff] %vm340_vm0, %v1535_v6  ;;  %v1498_v32 = vmul.f32 %v1466_v33, %v3124_v44 }
 0x365   : > { %v2296_v58 = vpop.eup %2295  ;;  %1566 = vst.msk [vmem:[%s3164_s24 + $0xd0] sm:$0xff] %vm340_vm0, %v1534_v57  ;;  %v1497_v61 = vmul.f32 %v1465_v19, %v3128_v60 }
 0x366   : > { %v2298_v55 = vpop.eup %2297  ;;  %v1537_v20 = vadd.f32 %v3159_v34, %v1498_v32  ;;  %v1468_v59 = vmul.f32 %v2296_v58, %v3152_v53 }
 0x367   : > { %v1536_v17 = vadd.f32 %v3159_v34, %v1497_v61  ;;  %v1467_v5 = vmul.f32 %v2298_v55, %v3152_v53  ;;  %1578 = sbr.rel (!%p2453_p4) target bundleno = 934 (0x3a6), region = 52 }
 0x368   : > { %1569 = vst.msk [vmem:[%s3164_s24 + $0xe8] sm:$0xff] %vm340_vm0, %v1537_v20  ;;  %v1500_v62 = vmul.f32 %v1468_v59, %v3136_v56 }
 0x369   : > { %1568 = vst.msk [vmem:[%s3164_s24 + $0xe0] sm:$0xff] %vm340_vm0, %v1536_v17  ;;  %v1499_v44 = vmul.f32 %v1467_v5, %v3140_v14 }
 0x36a   : > { %v1539_v47 = vadd.f32 %v3159_v34, %v1500_v62 }
 0x36b   : > { %v1538_v60 = vadd.f32 %v3159_v34, %v1499_v44 }
 0x36c   : > { %1571 = vst.msk [vmem:[%s3164_s24 + $0xf8] sm:$0xff] %vm340_vm0, %v1539_v47 }
 0x36d   : > { %1570 = vst.msk [vmem:[%s3164_s24 + $0xf0] sm:$0xff] %vm340_vm0, %v1538_v60 }
 0x36e   : > { %s3479_s10 = smov (!%p1581_p8, %s1580_s10), 32 }
 0x36f   : > { %s1956_s15 = sshll.u32 %s3479_s10, 7 }
 0x370   : > { %p1959_p9 = scmp.eq.s32.totalorder %s1956_s15, 0 }
 0x371   : > { %s3335_s17 = sshrl.u32 (!%p1959_p9), %s3479_s10, 5 }
 0x372   : > { %1589 = sbr.rel (%p1959_p9) target bundleno = 934 (0x3a6), region = 56  ;;  %p1960_p10 = scmp.le.s32.totalorder (!%p1959_p9), %s3335_s17, 0 }
 0x379   : > { %1867 = sbr.rel (%p1960_p10) target bundleno = 913 (0x391), region = 132  ;;  %s3470_s27 = smov (!%p1960_p10), %s3329_s14 }
 0x37a   : > { %s3471_s9 = smov (!%p1960_p10), %s3164_s24  ;;  %s3344_s16 = smov (!%p1960_p10), 0  }
 0x37b   : > { %s3346_s18 = smov (!%p1960_p10), 0  }
 0x380 LB: >> { %v1713_v56 = vld [vmem:[%s2361_s9] sm:$0xff]  ;;  %v1715_v14 = vld [vmem:[%s2361_s9 + $0x8] sm:$0xff]  ;;  %v1717_v53 = vld [vmem:[%s2361_s9 + $0x10] sm:$0xff]  ;;  %s1777_s19 = sadd.s32 1, %s2365_s16  ;;  %s1707_s18 = sadd.s32 1, %s2369_s18   ;;  %s2369_s18 = sphi %s3346_s18, %s1707_s18   ;;  %s2365_s16 = sphi %s3344_s16, %s3474_s16   ;;  %s2361_s9 = sphi %s3471_s9, %s3473_s9   ;;  %s2357_s27 = sphi %s3470_s27, %s3472_s27  }
 0x381   : >> { %1714 = vst [vmem:[%s2357_s27] sm:$0xff] %v1713_v56  ;;  %1716 = vst [vmem:[%s2357_s27 + $0x8] sm:$0xff] %v1715_v14  ;;  %v1719_v34 = vld [vmem:[%s2361_s9 + $0x18] sm:$0xff]  ;;  %v1721_v52 = vld [vmem:[%s2361_s9 + $0x20] sm:$0xff]  ;;  %p1778_p11 = scmp.ge.s32.totalorder %s1777_s19, %s3335_s17  ;;  %p1706_p12 = scmp.ge.s32.totalorder %s1707_s18, %s3335_s17 }
 0x382   : >> { %1718 = vst [vmem:[%s2357_s27 + $0x10] sm:$0xff] %v1717_v53  ;;  %v1723_v26 = vld [vmem:[%s2361_s9 + $0x28] sm:$0xff]  ;;  %1720 = vst [vmem:[%s2357_s27 + $0x18] sm:$0xff] %v1719_v34  ;;  %v1725_v3 = vld [vmem:[%s2361_s9 + $0x30] sm:$0xff] }
 0x383   : >> { %1722 = vst [vmem:[%s2357_s27 + $0x20] sm:$0xff] %v1721_v52  ;;  %1724 = vst [vmem:[%s2357_s27 + $0x28] sm:$0xff] %v1723_v26  ;;  %v1727_v46 = vld [vmem:[%s2361_s9 + $0x38] sm:$0xff]  ;;  %v1729_v38 = vld [vmem:[%s2361_s9 + $0x40] sm:$0xff]  ;;  %s3481_s19 = smov (%p1778_p11, %s1777_s19), 0 }
 0x384   : >> { %1726 = vst [vmem:[%s2357_s27 + $0x30] sm:$0xff] %v1725_v3  ;;  %1728 = vst [vmem:[%s2357_s27 + $0x38] sm:$0xff] %v1727_v46  ;;  %v1731_v18 = vld [vmem:[%s2361_s9 + $0x48] sm:$0xff]  ;;  %v1733_v10 = vld [vmem:[%s2361_s9 + $0x50] sm:$0xff]  ;;  %s1961_s20 = sshll.u32 %s3481_s19, 8  ;;  %s3474_s16 = smov %s3481_s19 }
 0x385   : >> { %1730 = vst [vmem:[%s2357_s27 + $0x40] sm:$0xff] %v1729_v38  ;;  %v1735_v1 = vld [vmem:[%s2361_s9 + $0x58] sm:$0xff]  ;;  %1732 = vst [vmem:[%s2357_s27 + $0x48] sm:$0xff] %v1731_v18  ;;  %v1737_v13 = vld [vmem:[%s2361_s9 + $0x60] sm:$0xff]  ;;  %s3402_s21 = scalar_lea.vmem %s3164_s24, %s1961_s20 [#allocation2]   ;;  %s1783_s22 = scalar_lea.vmem %s3329_s14, %s1961_s20  }
 0x386   : >> { %1734 = vst [vmem:[%s2357_s27 + $0x50] sm:$0xff] %v1733_v10  ;;  %1736 = vst [vmem:[%s2357_s27 + $0x58] sm:$0xff] %v1735_v1  ;;  %v1739_v39 = vld [vmem:[%s2361_s9 + $0x68] sm:$0xff]  ;;  %v1741_v25 = vld [vmem:[%s2361_s9 + $0x70] sm:$0xff] }
 0x387   : >> { %1738 = vst [vmem:[%s2357_s27 + $0x60] sm:$0xff] %v1737_v13  ;;  %1740 = vst [vmem:[%s2357_s27 + $0x68] sm:$0xff] %v1739_v39  ;;  %v1743_v9 = vld [vmem:[%s2361_s9 + $0x78] sm:$0xff]  ;;  %v1745_v42 = vld [vmem:[%s2361_s9 + $0x80] sm:$0xff] }
 0x388   : >> { %1742 = vst [vmem:[%s2357_s27 + $0x70] sm:$0xff] %v1741_v25  ;;  %v1747_v21 = vld [vmem:[%s2361_s9 + $0x88] sm:$0xff]  ;;  %1744 = vst [vmem:[%s2357_s27 + $0x78] sm:$0xff] %v1743_v9  ;;  %v1749_v30 = vld [vmem:[%s2361_s9 + $0x90] sm:$0xff] }
 0x389   : >> { %1746 = vst [vmem:[%s2357_s27 + $0x80] sm:$0xff] %v1745_v42  ;;  %1748 = vst [vmem:[%s2357_s27 + $0x88] sm:$0xff] %v1747_v21  ;;  %v1751_v2 = vld [vmem:[%s2361_s9 + $0x98] sm:$0xff]  ;;  %v1753_v29 = vld [vmem:[%s2361_s9 + $0xa0] sm:$0xff] }
 0x38a   : >> { %1750 = vst [vmem:[%s2357_s27 + $0x90] sm:$0xff] %v1749_v30  ;;  %1752 = vst [vmem:[%s2357_s27 + $0x98] sm:$0xff] %v1751_v2  ;;  %v1755_v51 = vld [vmem:[%s2361_s9 + $0xa8] sm:$0xff]  ;;  %v1757_v37 = vld [vmem:[%s2361_s9 + $0xb0] sm:$0xff]  ;;  %1709 = sbr.rel (!%p1706_p12) target bundleno = 896 (0x380), region = 138 }
 0x38b   : >> { %1754 = vst [vmem:[%s2357_s27 + $0xa0] sm:$0xff] %v1753_v29  ;;  %v1759_v31 = vld [vmem:[%s2361_s9 + $0xb8] sm:$0xff]  ;;  %1756 = vst [vmem:[%s2357_s27 + $0xa8] sm:$0xff] %v1755_v51  ;;  %v1761_v16 = vld [vmem:[%s2361_s9 + $0xc0] sm:$0xff] }
 0x38c   : >> { %1758 = vst [vmem:[%s2357_s27 + $0xb0] sm:$0xff] %v1757_v37  ;;  %1760 = vst [vmem:[%s2357_s27 + $0xb8] sm:$0xff] %v1759_v31  ;;  %v1763_v8 = vld [vmem:[%s2361_s9 + $0xc8] sm:$0xff]  ;;  %v1765_v27 = vld [vmem:[%s2361_s9 + $0xd0] sm:$0xff] }
 0x38d   : >> { %1762 = vst [vmem:[%s2357_s27 + $0xc0] sm:$0xff] %v1761_v16  ;;  %1764 = vst [vmem:[%s2357_s27 + $0xc8] sm:$0xff] %v1763_v8  ;;  %v1767_v11 = vld [vmem:[%s2361_s9 + $0xd8] sm:$0xff]  ;;  %v1769_v22 = vld [vmem:[%s2361_s9 + $0xe0] sm:$0xff] }
 0x38e   : >> { %1766 = vst [vmem:[%s2357_s27 + $0xd0] sm:$0xff] %v1765_v27  ;;  %v1771_v45 = vld [vmem:[%s2361_s9 + $0xe8] sm:$0xff]  ;;  %1768 = vst [vmem:[%s2357_s27 + $0xd8] sm:$0xff] %v1767_v11  ;;  %v1773_v63 = vld [vmem:[%s2361_s9 + $0xf0] sm:$0xff] }
 0x38f   : >> { %1770 = vst [vmem:[%s2357_s27 + $0xe0] sm:$0xff] %v1769_v22  ;;  %1772 = vst [vmem:[%s2357_s27 + $0xe8] sm:$0xff] %v1771_v45  ;;  %v1775_v36 = vld [vmem:[%s2361_s9 + $0xf8] sm:$0xff]  ;;  %s3473_s9 = smov %s3402_s21 }
 0x390   : >> { %1774 = vst [vmem:[%s2357_s27 + $0xf0] sm:$0xff] %v1773_v63  ;;  %1776 = vst [vmem:[%s2357_s27 + $0xf8] sm:$0xff] %v1775_v36  ;;  %s3472_s27 = smov %s1783_s22 }
 0x391 PF: > { %s3443_s23 = sand.u32 31, %s3479_s10   ;;  %s1972_s26 = sshll.u32 %s3335_s17, 8 }
 0x392   : > { %s1788_s29 = scalar_lea.vmem %s3164_s24, %s1972_s26 [#allocation2]   ;;  %s1790_s30 = scalar_lea.vmem %s3329_s14, %s1972_s26  }
 0x393   : > { %p1966_p13 = scmp.le.s32.totalorder %s3443_s23, 0 }
 0x394   : > { %s2371_s11 = smov (!%p1966_p13), %s1790_s30   ;;  %s2375_s12 = smov (!%p1966_p13), %s1788_s29  }
 0x395   : > { %1881 = sbr.rel (%p1966_p13) target bundleno = 934 (0x3a6), region = 143  ;;  %s2379_s13 = smov (!%p1966_p13), 0  }
 0x396   : > { %s2383_s15 = smov (!%p1966_p13), 0  }
 0x39c LB: >> { %v1800_v54 = vld [vmem:[%s2377_s12] sm:$0xff]  ;;  %s1802_s10 = sadd.s32 1, %s2381_s13  ;;  %s1794_s15 = sadd.s32 1, %s2385_s15   ;;  %s2385_s15 = sphi %s2383_s15, %s1794_s15   ;;  %s2381_s13 = sphi %s2379_s13, %s2380_s13   ;;  %s2377_s12 = sphi %s2375_s12, %s1807_s12   ;;  %s2373_s11 = sphi %s2371_s11, %s1808_s11  }
 0x39d   : >> { %1801 = vst [vmem:[%s2373_s11] sm:$0xff] %v1800_v54  ;;  %p1803_p0 = scmp.ge.s32.totalorder %s1802_s10, %s3443_s23  ;;  %p1793_p1 = scmp.ge.s32.totalorder %s1794_s15, %s3443_s23 }
 0x39f   : >> { %s3483_s10 = smov (%p1803_p0, %s1802_s10), 0  ;;  %1796 = sbr.rel (!%p1793_p1) target bundleno = 924 (0x39c), region = 149 }
 0x3a0   : >> { %s1967_s24 = sshll.u32 %s3483_s10, 3  ;;  %s2380_s13 = smov %s3483_s10  }
 0x3a1   : >> { %s1807_s12 = scalar_lea.vmem %s1788_s29, %s1967_s24 [#allocation2]   ;;  %s1808_s11 = scalar_lea.vmem %s1790_s30, %s1967_s24  }
 0x3a6 PF: > { %p14_p2 = scmp.ge.s32.totalorder %s2443_s28, 6   ;;  %s3475_s24 = smov %s2349_s25 }
 0x3a7   : > { %s3476_s25 = smov %s2451_s8  ;;  %s3477_s26 = smov %s2443_s28 }
 0x3a8   :  { %16 = sbr.rel (!%p14_p2) target bundleno = 2 (0x2), region = 160 }

</bundles_post_ra>
